<compile_context>
chip_gen: v6e
topology: v6e:2x2x1
jax: 0.10.0
libtpu: 0.0.40
codegen_flags: <defaults>
</compile_context>

<pallas_src>
import functools

import jax
import jax.numpy as jnp
from jax import lax
from jax.experimental import pallas as pl
from jax.experimental.pallas import tpu as pltpu

_FALLBACK_VMEM = 64 * 1024 * 1024


def _vmem_capacity_bytes():
    """Generation-aware VMEM capacity (v7x: 64 MiB/TC, v5e/v6e: 128 MiB)."""
    try:
        info = pltpu.get_tpu_info()
        cap = int(getattr(info, "vmem_capacity_bytes", 0) or 0)
        if cap > 0:
            return cap
    except Exception:
        pass
    return _FALLBACK_VMEM


# ---------------------------------------------------------------------------
# Fused kernel: one (batch image, output-row tile) per grid point.
# ---------------------------------------------------------------------------
def _fused_kernel(xm_ref, xh0_ref, xh1_ref, w1_ref, b1_ref, wd_ref, bd_ref,
                  w3_ref, b3_ref, o_ref, h_ref, *,
                  stride, th, halo_rows, W, Wo, use_res, zero_bottom_row):
    main_rows = th * stride
    needed = main_rows + halo_rows
    Wp = W + 2
    hidden = w1_ref.shape[1]
    Cout = w3_ref.shape[1]
    r = pl.program_id(1)

    w1 = w1_ref[...]                                   # (Cin, hidden) bf16, BN folded
    b1 = b1_ref[...]                                   # (1, hidden)   f32

    def expand(x2d):                                   # padded-input rows -> hidden
        acc = jnp.dot(x2d, w1, preferred_element_type=jnp.float32)
        return jnp.clip(acc + b1, 0.0, 6.0)

    # --- 1x1 expand + BN + ReLU6, written straight into the h scratch ----------
    # (no xwin assembly copy: one dot for the main rows, 1-2 tiny dots for halos)
    xm = xm_ref[0]                                     # (main_rows, Wp, Cin) bf16
    h_main = expand(xm.reshape(main_rows * Wp, -1))
    h_ref[0:main_rows, :, :] = h_main.reshape(main_rows, Wp, hidden)
    halo_refs = (xh0_ref, xh1_ref)
    for j in range(halo_rows):
        h_ref[main_rows + j, :, :] = expand(halo_refs[j][0, 0])

    # PyTorch zero-pads the *hidden* activation before the depthwise conv, so the
    # expand bias must not leak into spatial padding.  Overwrite just the border
    # positions: the two padded columns always, the padded top/bottom row only on
    # the first/last row tile (cheap masked stores instead of a full-h select).
    zcol = jnp.zeros((needed, 1, hidden), jnp.float32)
    h_ref[:, 0:1, :] = zcol
    h_ref[:, Wp - 1:Wp, :] = zcol

    @pl.when(r == 0)
    def _():
        h_ref[0:1, :, :] = jnp.zeros((1, Wp, hidden), jnp.float32)

    if zero_bottom_row:
        @pl.when(r == pl.num_programs(1) - 1)
        def _():
            h_ref[needed - 1:needed, :, :] = jnp.zeros((1, Wp, hidden), jnp.float32)

    # --- 3x3 depthwise conv (stride) + BN + ReLU6 on the VPU --------------------
    wd = wd_ref[...]                                   # (9, hidden), BN scale folded
    taps = [wd[k].reshape(1, 1, hidden) for k in range(9)]   # hoisted broadcasts
    if stride == 1:
        # 3 column-shifted window loads; row taps are cheap leading-dim slices.
        cols = [h_ref[:, dw:dw + Wo, :] for dw in range(3)]
        row_sel = lambda t, dh: t[dh:dh + th]
    else:
        # de-interleave W into even/odd phases once -> unit-stride column taps.
        h = h_ref[...]
        ph0 = h[:, 0::2, :]
        ph1 = h[:, 1::2, :]
        cols = [ph0[:, 0:Wo, :], ph1[:, 0:Wo, :], ph0[:, 1:Wo + 1, :]]
        row_sel = lambda t, dh: t[dh:dh + (th - 1) * stride + 1:stride]

    acc = jnp.zeros((th, Wo, hidden), jnp.float32)
    for dh in range(3):
        for dw in range(3):
            acc = acc + row_sel(cols[dw], dh) * taps[dh * 3 + dw]
    d = jnp.clip(acc + bd_ref[...].reshape(1, 1, hidden), 0.0, 6.0)

    # --- 1x1 project + BN (+ residual from the already-resident input rows) -----
    y = jnp.dot(d.reshape(th * Wo, hidden).astype(jnp.bfloat16), w3_ref[...],
                preferred_element_type=jnp.float32) + b3_ref[...]
    y3 = y.reshape(th, Wo, Cout)

    if use_res:
        # Residual needs window rows 1..th: rows 1..th-1 live in the main block,
        # row th is the first halo row (stride==1 here, so main_rows == th).
        if th > 1:
            res_top = xm_ref[0, 1:th, 1:W + 1, :].astype(jnp.float32)
            o_ref[0, 0:th - 1, :, :] = y3[0:th - 1] + res_top
        res_bot = xh0_ref[0, 0:1, 1:W + 1, :].astype(jnp.float32)
        o_ref[0, th - 1:th, :, :] = y3[th - 1:th] + res_bot
    else:
        o_ref[0, :, :, :] = y3


# ---------------------------------------------------------------------------
# Row-tile picker (generation-aware VMEM budget, >=2 grid points preferred)
# ---------------------------------------------------------------------------
def _pick_row_tile(N, Ho, Wo, Wp, Cin, hidden, Cout, stride, vmem_cap):
    halo = 3 - stride
    target = max(2 << 20, min(16 << 20, vmem_cap // 8))
    lanes = lambda c: ((c + 127) // 128) * 128          # physical lane padding in VMEM

    def ws(t):
        needed = (t - 1) * stride + 3
        main = t * stride
        return (2 * main * Wp * lanes(Cin) * 2          # double-buffered input (bf16)
                + needed * Wp * lanes(hidden) * 4       # h scratch (f32)
                + 4 * t * Wo * lanes(hidden) * 4        # live depthwise values
                + 2 * t * Wo * lanes(Cout) * 4)         # double-buffered output (f32)

    divs = [t for t in range(Ho, 0, -1) if Ho % t == 0]
    fitting = [t for t in divs if ws(t) <= target] or [1]
    # >= 2 total grid points so v7x's second TensorCore / pipelining get work
    good = [t for t in fitting if N * (Ho // t) >= 2] or fitting
    # prefer >= 2 row tiles when the halo recompute overhead stays small
    better = [t for t in good if Ho // t >= 2 and t * stride >= 4 * halo] or good
    return better[0]


# ---------------------------------------------------------------------------
# pallas_call wrapper
# ---------------------------------------------------------------------------
def _fused_call(xp, w1s, b1, wds, bd, w3s, b3, *, stride, th, Ho, Wo, H, W,
                use_res, vmem_limit):
    N, Hp, Wp, Cin = xp.shape
    hidden = w1s.shape[1]
    Cout = w3s.shape[1]
    main_rows = th * stride
    halo_rows = 3 - stride
    needed = main_rows + halo_rows
    R = Ho // th

    # Static bounds checks for the single-row halo blocks (correctness review).
    h1_off = 1 if halo_rows == 2 else 0      # duplicate halo row 0 when only 1 needed
    last_halo_row = R * main_rows + h1_off
    assert last_halo_row <= Hp - 1, (last_halo_row, Hp)
    # Residual path assumptions (guaranteed by the use_res condition).
    if use_res:
        assert stride == 1 and Wo == W and Cin == Cout and main_rows == th
    zero_bottom_row = ((Ho - 1) * stride + 2 == H + 1)

    kern = functools.partial(
        _fused_kernel, stride=stride, th=th, halo_rows=halo_rows, W=W, Wo=Wo,
        use_res=use_res, zero_bottom_row=zero_bottom_row)

    const2 = lambda n, r: (0, 0)

    return pl.pallas_call(
        kern,
        out_shape=jax.ShapeDtypeStruct((N, Ho, Wo, Cout), jnp.float32),
        grid=(N, R),
        in_specs=[
            # main input row block of this tile (bf16, channels unpadded)
            pl.BlockSpec((1, main_rows, Wp, Cin), lambda n, r: (n, r, 0, 0)),
            # two single-row halo views (row-block size 1 -> no 8-row alignment)
            pl.BlockSpec((1, 1, Wp, Cin),
                         lambda n, r: (n, (r + 1) * main_rows, 0, 0)),
            pl.BlockSpec((1, 1, Wp, Cin),
                         lambda n, r: (n, (r + 1) * main_rows + h1_off, 0, 0)),
            pl.BlockSpec((Cin, hidden), const2),     # expand weight (BN folded, bf16)
            pl.BlockSpec((1, hidden), const2),       # expand BN bias
            pl.BlockSpec((9, hidden), const2),       # depthwise taps (BN folded, f32)
            pl.BlockSpec((1, hidden), const2),       # depthwise BN bias
            pl.BlockSpec((hidden, Cout), const2),    # project weight (BN folded, bf16)
            pl.BlockSpec((1, Cout), const2),         # project BN bias
        ],
        out_specs=pl.BlockSpec((1, th, Wo, Cout), lambda n, r: (n, r, 0, 0)),
        scratch_shapes=[pltpu.VMEM((needed, Wp, hidden), jnp.float32)],
        compiler_params=pltpu.CompilerParams(
            dimension_semantics=("parallel", "parallel"),
            vmem_limit_bytes=vmem_limit),
    )(xp, xp, xp, w1s, b1, wds, bd, w3s, b3)


# ---------------------------------------------------------------------------
# Parameter construction (deterministic, BN folded to scale/bias)
# ---------------------------------------------------------------------------
def _fold_bn(key, channels, eps=1e-5):
    k1, k2, k3, k4 = jax.random.split(key, 4)
    gamma = jax.random.uniform(k1, (channels,), minval=0.5, maxval=1.5)
    beta = 0.1 * jax.random.normal(k2, (channels,))
    mean = 0.1 * jax.random.normal(k3, (channels,))
    var = jax.random.uniform(k4, (channels,), minval=0.5, maxval=1.5)
    scale = gamma / jnp.sqrt(var + eps)
    bias = beta - mean * scale
    return (scale.reshape(1, channels).astype(jnp.float32),
            bias.reshape(1, channels).astype(jnp.float32))


def make_params(key, input_channels, output_channels, expand_ratio):
    hidden = int(round(input_channels * expand_ratio))
    keys = jax.random.split(key, 6)
    w1 = 0.1 * jax.random.normal(keys[0], (input_channels, hidden), jnp.float32)
    wd = 0.1 * jax.random.normal(keys[1], (3, 3, hidden), jnp.float32)
    w3 = 0.1 * jax.random.normal(keys[2], (hidden, output_channels), jnp.float32)
    s1, b1 = _fold_bn(keys[3], hidden)
    sd, bd = _fold_bn(keys[4], hidden)
    s3, b3 = _fold_bn(keys[5], output_channels)
    return {"w1": w1, "s1": s1, "b1": b1,
            "wd": wd.reshape(9, hidden), "sd": sd, "bd": bd,
            "w3": w3, "s3": s3, "b3": b3}


# ---------------------------------------------------------------------------
# Full InvertedResidual forward (NCHW in/out, like the PyTorch module)
# ---------------------------------------------------------------------------
@functools.partial(jax.jit, static_argnums=(2,))
def inverted_residual_forward(x_nchw, params, stride):
    N, Cin, H, W = x_nchw.shape
    hidden = params["w1"].shape[1]
    Cout = params["w3"].shape[1]
    use_res = (stride == 1) and (Cin == Cout)

    Ho = (H + 2 - 3) // stride + 1
    Wo = (W + 2 - 3) // stride + 1
    Wp = W + 2

    # NCHW -> NHWC (bf16) + spatial zero halo.  Channels stay exactly Cin: no
    # 128-lane zero padding in HBM (input DMA reads only real channels).
    x = jnp.transpose(x_nchw, (0, 2, 3, 1)).astype(jnp.bfloat16)
    xp = jnp.pad(x, ((0, 0), (1, 1), (1, 1), (0, 0)))

    # Fold BN scales into the conv weights (biases stay separate); MXU weights
    # stored bf16, VPU-side depthwise weights / biases stay f32.
    w1s = (params["w1"] * params["s1"]).astype(jnp.bfloat16)      # (Cin, hidden)
    wds = (params["wd"] * params["sd"]).astype(jnp.float32)       # (9, hidden)
    w3s = (params["w3"] * params["s3"]).astype(jnp.bfloat16)      # (hidden, Cout)
    b1 = params["b1"].astype(jnp.float32)
    bd = params["bd"].astype(jnp.float32)
    b3 = params["b3"].astype(jnp.float32)

    vmem_cap = _vmem_capacity_bytes()
    th = _pick_row_tile(N, Ho, Wo, Wp, Cin, hidden, Cout, stride, vmem_cap)
    vmem_limit = int(max(32 * 1024 * 1024, min(vmem_cap // 2, 64 * 1024 * 1024)))

    out = _fused_call(xp, w1s, b1, wds, bd, w3s, b3, stride=stride, th=th,
                      Ho=Ho, Wo=Wo, H=H, W=W, use_res=use_res,
                      vmem_limit=vmem_limit)
    return jnp.transpose(out, (0, 3, 1, 2))            # back to NCHW


# ---------------------------------------------------------------------------
# Pure-JAX reference (f32, unfolded BN) for correctness checks
# ---------------------------------------------------------------------------
def reference_forward(x_nchw, params, stride):
    x = jnp.transpose(x_nchw, (0, 2, 3, 1)).astype(jnp.float32)
    N, H, W, Cin = x.shape
    hidden = params["w1"].shape[1]
    Cout = params["w3"].shape[1]
    h = jnp.clip(jnp.einsum("nhwc,cd->nhwd", x, params["w1"]) * params["s1"]
                 + params["b1"], 0.0, 6.0)
    hp = jnp.pad(h, ((0, 0), (1, 1), (1, 1), (0, 0)))
    Ho = (H - 1) // stride + 1
    Wo = (W - 1) // stride + 1
    wd = params["wd"].reshape(3, 3, hidden)
    acc = jnp.zeros((N, Ho, Wo, hidden), jnp.float32)
    for dh in range(3):
        for dw in range(3):
            acc = acc + hp[:, dh:dh + (Ho - 1) * stride + 1:stride,
                           dw:dw + (Wo - 1) * stride + 1:stride, :] * wd[dh, dw]
    d = jnp.clip(acc * params["sd"] + params["bd"], 0.0, 6.0)
    y = jnp.einsum("nhwc,cd->nhwd", d, params["w3"]) * params["s3"] + params["b3"]
    if stride == 1 and Cin == Cout:
        y = y + x
    return jnp.transpose(y, (0, 3, 1, 2))


if __name__ == "__main__":
    k1, k2, k3, k4 = jax.random.split(jax.random.PRNGKey(0), 4)

    # Case 1: stride=1, Cin == Cout -> residual path, 2 row tiles per image.
    N, Cin, H, W = 2, 4, 16, 16
    Cout, stride, expand_ratio = 4, 1, 2
    x1 = jax.random.normal(k1, (N, Cin, H, W), jnp.float32)
    p1 = make_params(k2, Cin, Cout, expand_ratio)
    out1 = inverted_residual_forward(x1, p1, stride)
    jax.block_until_ready(out1)
    assert out1.shape == (N, Cout, H, W)
    ref1 = reference_forward(x1, p1, stride)
    rel1 = float(jnp.max(jnp.abs(out1 - ref1))) / (float(jnp.max(jnp.abs(ref1))) + 1e-6)
    assert rel1 < 0.04, f"case1 relative error too large: {rel1}"

    # Case 2: stride=2, Cin != Cout (no residual), non-aligned hidden width.
    x2 = jax.random.normal(k3, (2, 4, 16, 16), jnp.float32)
    p2 = make_params(k4, 4, 8, 3)
    out2 = inverted_residual_forward(x2, p2, 2)
    jax.block_until_ready(out2)
    assert out2.shape == (2, 8, 8, 8)
    ref2 = reference_forward(x2, p2, 2)
    rel2 = float(jnp.max(jnp.abs(out2 - ref2))) / (float(jnp.max(jnp.abs(ref2))) + 1e-6)
    assert rel2 < 0.04, f"case2 relative error too large: {rel2}"

    print("KERNEL_OK")
</pallas_src>

<mosaic_0001>
module attributes {stable_mosaic.version = 11 : i64} {
  func.func @_fused_kernel(%arg0: i32, %arg1: i32, %arg2: memref<1x8x18x4xbf16, #tpu.memory_space<vmem>>, %arg3: memref<1x1x18x4xbf16, #tpu.memory_space<vmem>>, %arg4: memref<1x1x18x4xbf16, #tpu.memory_space<vmem>>, %arg5: memref<4x8xbf16, #tpu.memory_space<vmem>>, %arg6: memref<1x8xf32, #tpu.memory_space<vmem>>, %arg7: memref<9x8xf32, #tpu.memory_space<vmem>>, %arg8: memref<1x8xf32, #tpu.memory_space<vmem>>, %arg9: memref<8x4xbf16, #tpu.memory_space<vmem>>, %arg10: memref<1x4xf32, #tpu.memory_space<vmem>>, %arg11: memref<1x8x16x4xf32, #tpu.memory_space<vmem>>, %arg12: memref<10x18x8xf32, #tpu.memory_space<vmem>>) attributes {dimension_semantics = [#tpu.dimension_semantics<parallel>, #tpu.dimension_semantics<parallel>], iteration_bounds = array<i64: 2, 2>, scalar_prefetch = 0 : i64, scratch_operands = 1 : i64, tpu.core_type = #tpu.core_type<tc>, window_params = [{transform_indices = @transform_0, window_bounds = array<i64: 1, 8, 18, 4>}, {transform_indices = @transform_1, window_bounds = array<i64: 1, 1, 18, 4>}, {transform_indices = @transform_2, window_bounds = array<i64: 1, 1, 18, 4>}, {pipeline_mode = #tpu.pipeline_mode<synchronous>, transform_indices = @transform_3, window_bounds = array<i64: 4, 8>}, {pipeline_mode = #tpu.pipeline_mode<synchronous>, transform_indices = @transform_4, window_bounds = array<i64: 1, 8>}, {pipeline_mode = #tpu.pipeline_mode<synchronous>, transform_indices = @transform_5, window_bounds = array<i64: 9, 8>}, {pipeline_mode = #tpu.pipeline_mode<synchronous>, transform_indices = @transform_6, window_bounds = array<i64: 1, 8>}, {pipeline_mode = #tpu.pipeline_mode<synchronous>, transform_indices = @transform_7, window_bounds = array<i64: 8, 4>}, {pipeline_mode = #tpu.pipeline_mode<synchronous>, transform_indices = @transform_8, window_bounds = array<i64: 1, 4>}, {transform_indices = @transform_9, window_bounds = array<i64: 1, 8, 16, 4>}]} {
    %c0 = arith.constant 0 : index
    %c0_0 = arith.constant 0 : index
    %0 = vector.load %arg5[%c0, %c0_0] : memref<4x8xbf16, #tpu.memory_space<vmem>>, vector<4x8xbf16>
    %c0_1 = arith.constant 0 : index
    %c0_2 = arith.constant 0 : index
    %1 = vector.load %arg6[%c0_1, %c0_2] : memref<1x8xf32, #tpu.memory_space<vmem>>, vector<1x8xf32>
    %c0_3 = arith.constant 0 : index
    %c0_4 = arith.constant 0 : index
    %c0_5 = arith.constant 0 : index
    %c0_6 = arith.constant 0 : index
    %2 = vector.load %arg2[%c0_3, %c0_4, %c0_5, %c0_6] : memref<1x8x18x4xbf16, #tpu.memory_space<vmem>>, vector<1x8x18x4xbf16>
    %3 = vector.shape_cast %2 : vector<1x8x18x4xbf16> to vector<8x18x4xbf16>
    %4 = vector.shape_cast %3 : vector<8x18x4xbf16> to vector<144x4xbf16>
    %cst = arith.constant dense<0.000000e+00> : vector<144x8xf32>
    %5 = tpu.matmul %4, %0, %cst {dimension_numbers = #tpu.dot_dimension_numbers<[1], [0], [0], [1], [0, 0, 1, 1], [], []>} : vector<144x4xbf16>, vector<4x8xbf16>, vector<144x8xf32> -> vector<144x8xf32>
    %6 = vector.broadcast %1 : vector<1x8xf32> to vector<144x8xf32>
    %7 = arith.addf %5, %6 : vector<144x8xf32>
    %cst_7 = arith.constant 0.000000e+00 : f32
    %cst_8 = arith.constant 6.000000e+00 : f32
    %8 = vector.broadcast %cst_7 : f32 to vector<144x8xf32>
    %9 = arith.maximumf %8, %7 : vector<144x8xf32>
    %10 = vector.broadcast %cst_8 : f32 to vector<144x8xf32>
    %11 = arith.minimumf %10, %9 : vector<144x8xf32>
    %12 = vector.shape_cast %11 : vector<144x8xf32> to vector<8x18x8xf32>
    %c0_9 = arith.constant 0 : index
    %c0_10 = arith.constant 0 : index
    %c0_11 = arith.constant 0 : index
    %13 = vector.load %arg12[%c0_9, %c0_10, %c0_11] : memref<10x18x8xf32, #tpu.memory_space<vmem>>, vector<8x18x8xf32>
    tpu.vector_store %arg12[%c0_9, %c0_10, %c0_11], %12 {strides = array<i32>} : memref<10x18x8xf32, #tpu.memory_space<vmem>>, vector<8x18x8xf32>,
    %c0_12 = arith.constant 0 : index
    %c0_13 = arith.constant 0 : index
    %c0_14 = arith.constant 0 : index
    %c0_15 = arith.constant 0 : index
    %14 = vector.load %arg3[%c0_12, %c0_13, %c0_14, %c0_15] : memref<1x1x18x4xbf16, #tpu.memory_space<vmem>>, vector<1x1x18x4xbf16>
    %15 = vector.shape_cast %14 : vector<1x1x18x4xbf16> to vector<18x4xbf16>
    %cst_16 = arith.constant dense<0.000000e+00> : vector<18x8xf32>
    %16 = tpu.matmul %15, %0, %cst_16 {dimension_numbers = #tpu.dot_dimension_numbers<[1], [0], [0], [1], [0, 0, 1, 1], [], []>} : vector<18x4xbf16>, vector<4x8xbf16>, vector<18x8xf32> -> vector<18x8xf32>
    %17 = vector.broadcast %1 : vector<1x8xf32> to vector<18x8xf32>
    %18 = arith.addf %16, %17 : vector<18x8xf32>
    %cst_17 = arith.constant 0.000000e+00 : f32
    %cst_18 = arith.constant 6.000000e+00 : f32
    %19 = vector.broadcast %cst_17 : f32 to vector<18x8xf32>
    %20 = arith.maximumf %19, %18 : vector<18x8xf32>
    %21 = vector.broadcast %cst_18 : f32 to vector<18x8xf32>
    %22 = arith.minimumf %21, %20 : vector<18x8xf32>
    %c8 = arith.constant 8 : index
    %c0_19 = arith.constant 0 : index
    %c0_20 = arith.constant 0 : index
    %23 = vector.load %arg12[%c8, %c0_19, %c0_20] : memref<10x18x8xf32, #tpu.memory_space<vmem>>, vector<1x18x8xf32>
    %24 = vector.shape_cast %23 : vector<1x18x8xf32> to vector<18x8xf32>
    %25 = vector.shape_cast %22 : vector<18x8xf32> to vector<1x18x8xf32>
    tpu.vector_store %arg12[%c8, %c0_19, %c0_20], %25 {strides = array<i32>} : memref<10x18x8xf32, #tpu.memory_space<vmem>>, vector<1x18x8xf32>,
    %c0_21 = arith.constant 0 : index
    %c0_22 = arith.constant 0 : index
    %c0_23 = arith.constant 0 : index
    %c0_24 = arith.constant 0 : index
    %26 = vector.load %arg4[%c0_21, %c0_22, %c0_23, %c0_24] : memref<1x1x18x4xbf16, #tpu.memory_space<vmem>>, vector<1x1x18x4xbf16>
    %27 = vector.shape_cast %26 : vector<1x1x18x4xbf16> to vector<18x4xbf16>
    %cst_25 = arith.constant dense<0.000000e+00> : vector<18x8xf32>
    %28 = tpu.matmul %27, %0, %cst_25 {dimension_numbers = #tpu.dot_dimension_numbers<[1], [0], [0], [1], [0, 0, 1, 1], [], []>} : vector<18x4xbf16>, vector<4x8xbf16>, vector<18x8xf32> -> vector<18x8xf32>
    %29 = vector.broadcast %1 : vector<1x8xf32> to vector<18x8xf32>
    %30 = arith.addf %28, %29 : vector<18x8xf32>
    %cst_26 = arith.constant 0.000000e+00 : f32
    %cst_27 = arith.constant 6.000000e+00 : f32
    %31 = vector.broadcast %cst_26 : f32 to vector<18x8xf32>
    %32 = arith.maximumf %31, %30 : vector<18x8xf32>
    %33 = vector.broadcast %cst_27 : f32 to vector<18x8xf32>
    %34 = arith.minimumf %33, %32 : vector<18x8xf32>
    %c9 = arith.constant 9 : index
    %c0_28 = arith.constant 0 : index
    %c0_29 = arith.constant 0 : index
    %35 = vector.load %arg12[%c9, %c0_28, %c0_29] : memref<10x18x8xf32, #tpu.memory_space<vmem>>, vector<1x18x8xf32>
    %36 = vector.shape_cast %35 : vector<1x18x8xf32> to vector<18x8xf32>
    %37 = vector.shape_cast %34 : vector<18x8xf32> to vector<1x18x8xf32>
    tpu.vector_store %arg12[%c9, %c0_28, %c0_29], %37 {strides = array<i32>} : memref<10x18x8xf32, #tpu.memory_space<vmem>>, vector<1x18x8xf32>,
    %cst_30 = arith.constant 0.000000e+00 : f32
    %38 = vector.broadcast %cst_30 : f32 to vector<10x1x8xf32>
    %c0_31 = arith.constant 0 : index
    %c0_32 = arith.constant 0 : index
    %c0_33 = arith.constant 0 : index
    %39 = vector.load %arg12[%c0_31, %c0_32, %c0_33] : memref<10x18x8xf32, #tpu.memory_space<vmem>>, vector<10x1x8xf32>
    tpu.vector_store %arg12[%c0_31, %c0_32, %c0_33], %38 {strides = array<i32>} : memref<10x18x8xf32, #tpu.memory_space<vmem>>, vector<10x1x8xf32>,
    %c0_34 = arith.constant 0 : index
    %c17 = arith.constant 17 : index
    %c0_35 = arith.constant 0 : index
    %40 = vector.load %arg12[%c0_34, %c17, %c0_35] : memref<10x18x8xf32, #tpu.memory_space<vmem>>, vector<10x1x8xf32>
    tpu.vector_store %arg12[%c0_34, %c17, %c0_35], %38 {strides = array<i32>} : memref<10x18x8xf32, #tpu.memory_space<vmem>>, vector<10x1x8xf32>,
    %c0_i32 = arith.constant 0 : i32
    %41 = arith.cmpi eq, %arg1, %c0_i32 : i32
    %42 = arith.extui %41 : i1 to i32
    %c0_i32_36 = arith.constant 0 : i32
    %43 = arith.cmpi ne, %42, %c0_i32_36 : i32
    scf.if %43 {
      %cst_72 = arith.constant 0.000000e+00 : f32
      %147 = vector.broadcast %cst_72 : f32 to vector<1x18x8xf32>
      %c0_73 = arith.constant 0 : index
      %c0_74 = arith.constant 0 : index
      %c0_75 = arith.constant 0 : index
      %148 = vector.load %arg12[%c0_73, %c0_74, %c0_75] : memref<10x18x8xf32, #tpu.memory_space<vmem>>, vector<1x18x8xf32>
      tpu.vector_store %arg12[%c0_73, %c0_74, %c0_75], %147 {strides = array<i32>} : memref<10x18x8xf32, #tpu.memory_space<vmem>>, vector<1x18x8xf32>,
    } else {
    }
    %c1_i32 = arith.constant 1 : i32
    %44 = arith.cmpi eq, %arg1, %c1_i32 : i32
    %45 = arith.extui %44 : i1 to i32
    %c0_i32_37 = arith.constant 0 : i32
    %46 = arith.cmpi ne, %45, %c0_i32_37 : i32
    scf.if %46 {
      %cst_72 = arith.constant 0.000000e+00 : f32
      %147 = vector.broadcast %cst_72 : f32 to vector<1x18x8xf32>
      %c9_73 = arith.constant 9 : index
      %c0_74 = arith.constant 0 : index
      %c0_75 = arith.constant 0 : index
      %148 = vector.load %arg12[%c9_73, %c0_74, %c0_75] : memref<10x18x8xf32, #tpu.memory_space<vmem>>, vector<1x18x8xf32>
      tpu.vector_store %arg12[%c9_73, %c0_74, %c0_75], %147 {strides = array<i32>} : memref<10x18x8xf32, #tpu.memory_space<vmem>>, vector<1x18x8xf32>,
    } else {
    }
    %c0_38 = arith.constant 0 : index
    %c0_39 = arith.constant 0 : index
    %47 = vector.load %arg7[%c0_38, %c0_39] : memref<9x8xf32, #tpu.memory_space<vmem>>, vector<9x8xf32>
    %48 = vector.extract_strided_slice %47 {offsets = [0, 0], sizes = [1, 8], strides = [1, 1]} : vector<9x8xf32> to vector<1x8xf32>
    %49 = vector.shape_cast %48 : vector<1x8xf32> to vector<8xf32>
    %50 = vector.shape_cast %49 : vector<8xf32> to vector<1x1x8xf32>
    %51 = vector.extract_strided_slice %47 {offsets = [1, 0], sizes = [1, 8], strides = [1, 1]} : vector<9x8xf32> to vector<1x8xf32>
    %52 = vector.shape_cast %51 : vector<1x8xf32> to vector<8xf32>
    %53 = vector.shape_cast %52 : vector<8xf32> to vector<1x1x8xf32>
    %54 = vector.extract_strided_slice %47 {offsets = [2, 0], sizes = [1, 8], strides = [1, 1]} : vector<9x8xf32> to vector<1x8xf32>
    %55 = vector.shape_cast %54 : vector<1x8xf32> to vector<8xf32>
    %56 = vector.shape_cast %55 : vector<8xf32> to vector<1x1x8xf32>
    %57 = vector.extract_strided_slice %47 {offsets = [3, 0], sizes = [1, 8], strides = [1, 1]} : vector<9x8xf32> to vector<1x8xf32>
    %58 = vector.shape_cast %57 : vector<1x8xf32> to vector<8xf32>
    %59 = vector.shape_cast %58 : vector<8xf32> to vector<1x1x8xf32>
    %60 = vector.extract_strided_slice %47 {offsets = [4, 0], sizes = [1, 8], strides = [1, 1]} : vector<9x8xf32> to vector<1x8xf32>
    %61 = vector.shape_cast %60 : vector<1x8xf32> to vector<8xf32>
    %62 = vector.shape_cast %61 : vector<8xf32> to vector<1x1x8xf32>
    %63 = vector.extract_strided_slice %47 {offsets = [5, 0], sizes = [1, 8], strides = [1, 1]} : vector<9x8xf32> to vector<1x8xf32>
    %64 = vector.shape_cast %63 : vector<1x8xf32> to vector<8xf32>
    %65 = vector.shape_cast %64 : vector<8xf32> to vector<1x1x8xf32>
    %66 = vector.extract_strided_slice %47 {offsets = [6, 0], sizes = [1, 8], strides = [1, 1]} : vector<9x8xf32> to vector<1x8xf32>
    %67 = vector.shape_cast %66 : vector<1x8xf32> to vector<8xf32>
    %68 = vector.shape_cast %67 : vector<8xf32> to vector<1x1x8xf32>
    %69 = vector.extract_strided_slice %47 {offsets = [7, 0], sizes = [1, 8], strides = [1, 1]} : vector<9x8xf32> to vector<1x8xf32>
    %70 = vector.shape_cast %69 : vector<1x8xf32> to vector<8xf32>
    %71 = vector.shape_cast %70 : vector<8xf32> to vector<1x1x8xf32>
    %72 = vector.extract_strided_slice %47 {offsets = [8, 0], sizes = [1, 8], strides = [1, 1]} : vector<9x8xf32> to vector<1x8xf32>
    %73 = vector.shape_cast %72 : vector<1x8xf32> to vector<8xf32>
    %74 = vector.shape_cast %73 : vector<8xf32> to vector<1x1x8xf32>
    %c0_40 = arith.constant 0 : index
    %c0_41 = arith.constant 0 : index
    %c0_42 = arith.constant 0 : index
    %75 = vector.load %arg12[%c0_40, %c0_41, %c0_42] : memref<10x18x8xf32, #tpu.memory_space<vmem>>, vector<10x16x8xf32>
    %c0_43 = arith.constant 0 : index
    %c1 = arith.constant 1 : index
    %c0_44 = arith.constant 0 : index
    %76 = vector.load %arg12[%c0_43, %c1, %c0_44] : memref<10x18x8xf32, #tpu.memory_space<vmem>>, vector<10x16x8xf32>
    %c0_45 = arith.constant 0 : index
    %c2 = arith.constant 2 : index
    %c0_46 = arith.constant 0 : index
    %77 = vector.load %arg12[%c0_45, %c2, %c0_46] : memref<10x18x8xf32, #tpu.memory_space<vmem>>, vector<10x16x8xf32>
    %cst_47 = arith.constant 0.000000e+00 : f32
    %78 = vector.broadcast %cst_47 : f32 to vector<8x16x8xf32>
    %79 = vector.extract_strided_slice %75 {offsets = [0, 0, 0], sizes = [8, 16, 8], strides = [1, 1, 1]} : vector<10x16x8xf32> to vector<8x16x8xf32>
    %80 = vector.broadcast %50 : vector<1x1x8xf32> to vector<8x16x8xf32>
    %81 = arith.mulf %79, %80 : vector<8x16x8xf32>
    %82 = arith.addf %78, %81 : vector<8x16x8xf32>
    %83 = vector.extract_strided_slice %76 {offsets = [0, 0, 0], sizes = [8, 16, 8], strides = [1, 1, 1]} : vector<10x16x8xf32> to vector<8x16x8xf32>
    %84 = vector.broadcast %53 : vector<1x1x8xf32> to vector<8x16x8xf32>
    %85 = arith.mulf %83, %84 : vector<8x16x8xf32>
    %86 = arith.addf %82, %85 : vector<8x16x8xf32>
    %87 = vector.extract_strided_slice %77 {offsets = [0, 0, 0], sizes = [8, 16, 8], strides = [1, 1, 1]} : vector<10x16x8xf32> to vector<8x16x8xf32>
    %88 = vector.broadcast %56 : vector<1x1x8xf32> to vector<8x16x8xf32>
    %89 = arith.mulf %87, %88 : vector<8x16x8xf32>
    %90 = arith.addf %86, %89 : vector<8x16x8xf32>
    %91 = vector.extract_strided_slice %75 {offsets = [1, 0, 0], sizes = [8, 16, 8], strides = [1, 1, 1]} : vector<10x16x8xf32> to vector<8x16x8xf32>
    %92 = vector.broadcast %59 : vector<1x1x8xf32> to vector<8x16x8xf32>
    %93 = arith.mulf %91, %92 : vector<8x16x8xf32>
    %94 = arith.addf %90, %93 : vector<8x16x8xf32>
    %95 = vector.extract_strided_slice %76 {offsets = [1, 0, 0], sizes = [8, 16, 8], strides = [1, 1, 1]} : vector<10x16x8xf32> to vector<8x16x8xf32>
    %96 = vector.broadcast %62 : vector<1x1x8xf32> to vector<8x16x8xf32>
    %97 = arith.mulf %95, %96 : vector<8x16x8xf32>
    %98 = arith.addf %94, %97 : vector<8x16x8xf32>
    %99 = vector.extract_strided_slice %77 {offsets = [1, 0, 0], sizes = [8, 16, 8], strides = [1, 1, 1]} : vector<10x16x8xf32> to vector<8x16x8xf32>
    %100 = vector.broadcast %65 : vector<1x1x8xf32> to vector<8x16x8xf32>
    %101 = arith.mulf %99, %100 : vector<8x16x8xf32>
    %102 = arith.addf %98, %101 : vector<8x16x8xf32>
    %103 = vector.extract_strided_slice %75 {offsets = [2, 0, 0], sizes = [8, 16, 8], strides = [1, 1, 1]} : vector<10x16x8xf32> to vector<8x16x8xf32>
    %104 = vector.broadcast %68 : vector<1x1x8xf32> to vector<8x16x8xf32>
    %105 = arith.mulf %103, %104 : vector<8x16x8xf32>
    %106 = arith.addf %102, %105 : vector<8x16x8xf32>
    %107 = vector.extract_strided_slice %76 {offsets = [2, 0, 0], sizes = [8, 16, 8], strides = [1, 1, 1]} : vector<10x16x8xf32> to vector<8x16x8xf32>
    %108 = vector.broadcast %71 : vector<1x1x8xf32> to vector<8x16x8xf32>
    %109 = arith.mulf %107, %108 : vector<8x16x8xf32>
    %110 = arith.addf %106, %109 : vector<8x16x8xf32>
    %111 = vector.extract_strided_slice %77 {offsets = [2, 0, 0], sizes = [8, 16, 8], strides = [1, 1, 1]} : vector<10x16x8xf32> to vector<8x16x8xf32>
    %112 = vector.broadcast %74 : vector<1x1x8xf32> to vector<8x16x8xf32>
    %113 = arith.mulf %111, %112 : vector<8x16x8xf32>
    %114 = arith.addf %110, %113 : vector<8x16x8xf32>
    %c0_48 = arith.constant 0 : index
    %c0_49 = arith.constant 0 : index
    %115 = vector.load %arg8[%c0_48, %c0_49] : memref<1x8xf32, #tpu.memory_space<vmem>>, vector<1x8xf32>
    %116 = vector.shape_cast %115 : vector<1x8xf32> to vector<1x1x8xf32>
    %117 = vector.broadcast %116 : vector<1x1x8xf32> to vector<8x16x8xf32>
    %118 = arith.addf %114, %117 : vector<8x16x8xf32>
    %cst_50 = arith.constant 0.000000e+00 : f32
    %cst_51 = arith.constant 6.000000e+00 : f32
    %119 = vector.broadcast %cst_50 : f32 to vector<8x16x8xf32>
    %120 = arith.maximumf %119, %118 : vector<8x16x8xf32>
    %121 = vector.broadcast %cst_51 : f32 to vector<8x16x8xf32>
    %122 = arith.minimumf %121, %120 : vector<8x16x8xf32>
    %123 = vector.shape_cast %122 : vector<8x16x8xf32> to vector<128x8xf32>
    %124 = arith.truncf %123 : vector<128x8xf32> to vector<128x8xbf16>
    %c0_52 = arith.constant 0 : index
    %c0_53 = arith.constant 0 : index
    %125 = vector.load %arg9[%c0_52, %c0_53] : memref<8x4xbf16, #tpu.memory_space<vmem>>, vector<8x4xbf16>
    %cst_54 = arith.constant dense<0.000000e+00> : vector<128x4xf32>
    %126 = tpu.matmul %124, %125, %cst_54 {dimension_numbers = #tpu.dot_dimension_numbers<[1], [0], [0], [1], [0, 0, 1, 1], [], []>} : vector<128x8xbf16>, vector<8x4xbf16>, vector<128x4xf32> -> vector<128x4xf32>
    %c0_55 = arith.constant 0 : index
    %c0_56 = arith.constant 0 : index
    %127 = vector.load %arg10[%c0_55, %c0_56] : memref<1x4xf32, #tpu.memory_space<vmem>>, vector<1x4xf32>
    %128 = vector.broadcast %127 : vector<1x4xf32> to vector<128x4xf32>
    %129 = arith.addf %126, %128 : vector<128x4xf32>
    %130 = vector.shape_cast %129 : vector<128x4xf32> to vector<8x16x4xf32>
    %c0_57 = arith.constant 0 : index
    %c1_58 = arith.constant 1 : index
    %c1_59 = arith.constant 1 : index
    %c0_60 = arith.constant 0 : index
    %131 = vector.load %arg2[%c0_57, %c1_58, %c1_59, %c0_60] : memref<1x8x18x4xbf16, #tpu.memory_space<vmem>>, vector<1x7x16x4xbf16>
    %132 = vector.shape_cast %131 : vector<1x7x16x4xbf16> to vector<7x16x4xbf16>
    %133 = arith.extf %132 : vector<7x16x4xbf16> to vector<7x16x4xf32>
    %134 = vector.extract_strided_slice %130 {offsets = [0, 0, 0], sizes = [7, 16, 4], strides = [1, 1, 1]} : vector<8x16x4xf32> to vector<7x16x4xf32>
    %135 = arith.addf %134, %133 : vector<7x16x4xf32>
    %c0_61 = arith.constant 0 : index
    %c0_62 = arith.constant 0 : index
    %c0_63 = arith.constant 0 : index
    %c0_64 = arith.constant 0 : index
    %136 = vector.load %arg11[%c0_61, %c0_62, %c0_63, %c0_64] : memref<1x8x16x4xf32, #tpu.memory_space<vmem>>, vector<1x7x16x4xf32>
    %137 = vector.shape_cast %136 : vector<1x7x16x4xf32> to vector<7x16x4xf32>
    %138 = vector.shape_cast %135 : vector<7x16x4xf32> to vector<1x7x16x4xf32>
    tpu.vector_store %arg11[%c0_61, %c0_62, %c0_63, %c0_64], %138 {strides = array<i32>} : memref<1x8x16x4xf32, #tpu.memory_space<vmem>>, vector<1x7x16x4xf32>,
    %c0_65 = arith.constant 0 : index
    %c0_66 = arith.constant 0 : index
    %c1_67 = arith.constant 1 : index
    %c0_68 = arith.constant 0 : index
    %139 = vector.load %arg3[%c0_65, %c0_66, %c1_67, %c0_68] : memref<1x1x18x4xbf16, #tpu.memory_space<vmem>>, vector<1x1x16x4xbf16>
    %140 = vector.shape_cast %139 : vector<1x1x16x4xbf16> to vector<1x16x4xbf16>
    %141 = arith.extf %140 : vector<1x16x4xbf16> to vector<1x16x4xf32>
    %142 = vector.extract_strided_slice %130 {offsets = [7, 0, 0], sizes = [1, 16, 4], strides = [1, 1, 1]} : vector<8x16x4xf32> to vector<1x16x4xf32>
    %143 = arith.addf %142, %141 : vector<1x16x4xf32>
    %c0_69 = arith.constant 0 : index
    %c7 = arith.constant 7 : index
    %c0_70 = arith.constant 0 : index
    %c0_71 = arith.constant 0 : index
    %144 = vector.load %arg11[%c0_69, %c7, %c0_70, %c0_71] : memref<1x8x16x4xf32, #tpu.memory_space<vmem>>, vector<1x1x16x4xf32>
    %145 = vector.shape_cast %144 : vector<1x1x16x4xf32> to vector<1x16x4xf32>
    %146 = vector.shape_cast %143 : vector<1x16x4xf32> to vector<1x1x16x4xf32>
    tpu.vector_store %arg11[%c0_69, %c7, %c0_70, %c0_71], %146 {strides = array<i32>} : memref<1x8x16x4xf32, #tpu.memory_space<vmem>>, vector<1x1x16x4xf32>,
    return
  }
  func.func @transform_0(%arg0: i32, %arg1: i32) -> (i32, i32, i32, i32) {
    %c0_i32 = arith.constant 0 : i32
    %c0_i32_0 = arith.constant 0 : i32
    %c0_i32_1 = arith.constant 0 : i32
    return %arg0, %arg1, %c0_i32, %c0_i32_0 : i32, i32, i32, i32
  }
  func.func @transform_1(%arg0: i32, %arg1: i32) -> (i32, i32, i32, i32) {
    %c1_i32 = arith.constant 1 : i32
    %0 = arith.addi %arg1, %c1_i32 : i32
    %c8_i32 = arith.constant 8 : i32
    %1 = arith.muli %0, %c8_i32 : i32
    %c0_i32 = arith.constant 0 : i32
    %c0_i32_0 = arith.constant 0 : i32
    %c0_i32_1 = arith.constant 0 : i32
    return %arg0, %1, %c0_i32, %c0_i32_0 : i32, i32, i32, i32
  }
  func.func @transform_2(%arg0: i32, %arg1: i32) -> (i32, i32, i32, i32) {
    %c1_i32 = arith.constant 1 : i32
    %0 = arith.addi %arg1, %c1_i32 : i32
    %c8_i32 = arith.constant 8 : i32
    %1 = arith.muli %0, %c8_i32 : i32
    %c1_i32_0 = arith.constant 1 : i32
    %2 = arith.addi %1, %c1_i32_0 : i32
    %c0_i32 = arith.constant 0 : i32
    %c0_i32_1 = arith.constant 0 : i32
    %c0_i32_2 = arith.constant 0 : i32
    return %arg0, %2, %c0_i32, %c0_i32_1 : i32, i32, i32, i32
  }
  func.func @transform_3(%arg0: i32, %arg1: i32) -> (i32, i32) {
    %c0_i32 = arith.constant 0 : i32
    %c0_i32_0 = arith.constant 0 : i32
    %c0_i32_1 = arith.constant 0 : i32
    return %c0_i32, %c0_i32_0 : i32, i32
  }
  func.func @transform_4(%arg0: i32, %arg1: i32) -> (i32, i32) {
    %c0_i32 = arith.constant 0 : i32
    %c0_i32_0 = arith.constant 0 : i32
    %c0_i32_1 = arith.constant 0 : i32
    return %c0_i32, %c0_i32_0 : i32, i32
  }
  func.func @transform_5(%arg0: i32, %arg1: i32) -> (i32, i32) {
    %c0_i32 = arith.constant 0 : i32
    %c0_i32_0 = arith.constant 0 : i32
    %c0_i32_1 = arith.constant 0 : i32
    return %c0_i32, %c0_i32_0 : i32, i32
  }
  func.func @transform_6(%arg0: i32, %arg1: i32) -> (i32, i32) {
    %c0_i32 = arith.constant 0 : i32
    %c0_i32_0 = arith.constant 0 : i32
    %c0_i32_1 = arith.constant 0 : i32
    return %c0_i32, %c0_i32_0 : i32, i32
  }
  func.func @transform_7(%arg0: i32, %arg1: i32) -> (i32, i32) {
    %c0_i32 = arith.constant 0 : i32
    %c0_i32_0 = arith.constant 0 : i32
    %c0_i32_1 = arith.constant 0 : i32
    return %c0_i32, %c0_i32_0 : i32, i32
  }
  func.func @transform_8(%arg0: i32, %arg1: i32) -> (i32, i32) {
    %c0_i32 = arith.constant 0 : i32
    %c0_i32_0 = arith.constant 0 : i32
    %c0_i32_1 = arith.constant 0 : i32
    return %c0_i32, %c0_i32_0 : i32, i32
  }
  func.func @transform_9(%arg0: i32, %arg1: i32) -> (i32, i32, i32, i32) {
    %c0_i32 = arith.constant 0 : i32
    %c0_i32_0 = arith.constant 0 : i32
    %c0_i32_1 = arith.constant 0 : i32
    return %arg0, %arg1, %c0_i32, %c0_i32_0 : i32, i32, i32, i32
  }
}

</mosaic_0001>

<bundles_post_ra>
// kernel: inverted_residual_forward.1
= control target key start
LH: loop header
LB: loop body
LE: loop exit
PB: predicated region body
PF: predicated region fallthrough
CT: control target
= control target key end

     0   :  { %s3831_s30 = smov 0   ;;  %s3833_s10 = smov 0   ;;  %s4671_s0 = inlined_call_operand.vmem [shape: bf16[2,18,18,4], index: 0, kind: input, shape index: {}, may-alias: {0,1,2}]   ;;  %s4672_s1 = inlined_call_operand.vmem [shape: bf16[2,18,18,4], index: 1, kind: input, shape index: {}, may-alias: {0,1,2}]   ;;  %s4673_s2 = inlined_call_operand.vmem [shape: bf16[2,18,18,4], index: 2, kind: input, shape index: {}, may-alias: {0,1,2}]   ;;  %s4674_s3 = inlined_call_operand.vmem [shape: bf16[4,8], index: 3, kind: input, shape index: {}]   ;;  %s4675_s4 = inlined_call_operand.vmem [shape: f32[1,8], index: 4, kind: input, shape index: {}]   ;;  %s4676_s5 = inlined_call_operand.vmem [shape: f32[9,8], index: 5, kind: input, shape index: {}]   ;;  %s4677_s6 = inlined_call_operand.vmem [shape: f32[1,8], index: 6, kind: input, shape index: {}]   ;;  %s4678_s7 = inlined_call_operand.vmem [shape: bf16[8,4], index: 7, kind: input, shape index: {}]   ;;  %s4679_s8 = inlined_call_operand.vmem [shape: f32[1,4], index: 8, kind: input, shape index: {}]   ;;  %s4680_s9 = inlined_call_operand.vmem [shape: f32[2,16,16,4], index: 9, kind: output, shape index: {}]  }
   0x1   :  { %4681 = sst [smem:[#allocation3_spill]] %s4674_s3  ;;  %s3835_s11 = smov 0  }
   0x2   :  { %s3837_s12 = smov 0   ;;  %s3839_s13 = smov 0  }
   0x3 LB: > { %s28_s14 = sadd.s32 1, %s3765_s11  ;;  %s31_s15 = sadd.s32 1, %s3769_s12  ;;  %s3773_s13 = sphi %s3839_s13, %s19_s13   ;;  %s3769_s12 = sphi %s3837_s12, %s4686_s12   ;;  %s3765_s11 = sphi %s3835_s11, %s4685_s11   ;;  %s3761_s10 = sphi %s3833_s10, %s4684_s10   ;;  %s3757_s30 = sphi %s3831_s30, %s4683_s30  }
   0x4   : > { %p29_p0 = scmp.ge.s32.totalorder %s28_s14, 2  ;;  %p3453_p1 = scmp.ge.s32.totalorder %s3773_s13, 1 }
   0x5   : > { %p371_p2 = scmp.lt.s32.totalorder %s3773_s13, 5 }
   0x6   : > { %s4688_s14 = smov (%p29_p0, %s28_s14), 0  ;;  %s4690_s15 = smov (!%p29_p0, %s31_s15), %s3769_s12 }
   0x7   : > { %p372_p3 = pnand %p3453_p1, %p371_p2  ;;  %p33_p4 = scmp.ge.s32.totalorder %s4690_s15, 2 }
   0x8   : > { %s4682_s3 = sld [smem:[#allocation3_spill]] (!%p372_p3)  ;;  %s3454_s18 = sshll.u32 (!%p372_p3), %s3757_s30, 3 }
   0x9   : > { %s4692_s15 = smov (%p33_p4, %s4690_s15), 0  ;;  %375 = sbr.rel (%p372_p3) target bundleno = 626 (0x272), region = 56 }
   0xa   : > { %p451_p5 = scmp.lt.s32.totalorder (!%p372_p3), %s3761_s10, 1  ;;  %p453_p6 = scmp.lt.s32.totalorder (!%p372_p3), %s3454_s18, 17 }
   0xb   : > { %p497_p7 = scmp.lt.s32.totalorder (!%p372_p3), %s3454_s18, 15  ;;  %s3881_s19 = sadd.s32 (!%p372_p3), 8, %s3454_s18 }
   0xc   : > { %p470_p8 = scmp.lt.s32.totalorder (!%p372_p3), %s3881_s19, 17  ;;  %s481_s25 = sadd.s32 (!%p372_p3), 1, %s3881_s19 }
   0xd   : > { %p484_p9 = scmp.lt.s32.totalorder (!%p372_p3), %s481_s25, 17  ;;  %p3514_p10 = scmp.ne.s32.totalorder (!%p372_p3), %s3757_s30, 0 }
   0xe   : > { %v3868_v0 = vld [vmem:[%s4682_s3] sm:$0x3]  ;;  %vm1527_vm0 = vcmask 1041408   ;;  %v567_v1 = vlaneseq  ;;  %v3775_v2 = vmov 0.0   ;;  %vm3776_vm1 = vmmov 0   ;;  %s4694_s10 = smov (!%p451_p5, %s3761_s10), 1 }
   0xf   : > { %3608 = vmatprep.subr.bf16.mxu0 %v3775_v2  ;;  %v3874_v3 = vsel %vm1527_vm0, %v3868_v0, 0  ;;  %3610 = vmatprep.mubr.msk.bf16.mxu0 %vm3776_vm1, %v3775_v2  ;;  %v3777_v4 = vmov 1966171168   ;;  %s454_s20 = scalar_select %p453_p6, %s3454_s18, 17  ;;  %vm1499_vm2 = vcmask 31744   ;;  %vm2348_vm3 = vcmask 64512  }
  0x10   : > { %3609 = vmatpush3.bf16.msra.mxu0 %v3874_v3  ;;  %v565_v5 = vunpack.c.l.s4 %v3777_v4  ;;  %3676 = vmatprep.subr.bf16.mxu1 %v3775_v2  ;;  %v3887_v7 = vshrl.u32 %v567_v1, 7  ;;  %s3891_s21 = smul.u32 54, %s4694_s10  ;;  %s3462_s22 = sshll.u32 %s4694_s10, 5  ;;  %vm2351_vm4 = vcmask 58368   ;;  %vm2524_vm5 = vcmask 57344  }
  0x11   : > { %3677 = vmatpush3.bf16.msra.mxu1 %v3874_v3  ;;  %3642 = vmatprep.mubr.msk.bf16.mxu1 %vm3776_vm1, %v3775_v2  ;;  %s3681_s23 = smul.u32 3, %s454_s20  ;;  %s4696_s18 = smov (!%p497_p7, %s3454_s18), 15 }
  0x12   : > { %v566_v6 = vunpack.c.0.s8 %v565_v5  ;;  %3678 = vmatprep.subr.msk.bf16.mxu1 %vm1527_vm0, %v3868_v0  ;;  %s3461_s27 = sshll.u32 %s4696_s18, 1  ;;  %s4698_s19 = smov (!%p470_p8, %s3881_s19), 17 }
  0x13   : > { %s457_s24 = sadd.s32 %s3891_s21, %s3681_s23  ;;  %s501_s10 = sadd.s32 %s3462_s22, %s3461_s27 }
  0x14   : > { %v3897_v8 = vsub.s32 %v566_v6, %v3887_v7  ;;  %s3455_s26 = sshll.u32 %s457_s24, 2  ;;  %s3463_s17 = sshll.u32 %s501_s10, 3 }
  0x15   : > { %s3903_s16 = scalar_lea.vmem %s4671_s0, %s3455_s26  ;;  %s3909_s3 = scalar_lea.vmem %s4680_s9, %s3463_s17 }
  0x16   : > { %v3464_v9 = vld.sshfl [vmem:[%s3903_s16] sm:$0x33 pattern:$0x75316420]  ;;  %s4700_s25 = smov (!%p484_p9, %s481_s25), 17  ;;  %s3683_s18 = smul.u32 3, %s4698_s19 }
  0x17   : > { %v3465_v10 = vld.sshfl [vmem:[%s3903_s16 + $0x4] sm:$0x33 pattern:$0x75316420]  ;;  %v563_v11 = vcombine.high %v3464_v9, %v3464_v9  ;;  %v570_v12 = vrot.slane %v3464_v9, %v3897_v8  ;;  %s3684_s22 = smul.u32 3, %s4700_s25 }
  0x18   : > { %v587_v13 = vcombine.high %v3465_v10, %v3465_v10  ;;  %v594_v14 = vrot.slane %v3465_v10, %v3897_v8  ;;  %v3466_v15 = vld.sshfl [vmem:[%s3903_s16 + $0x8] sm:$0x1 pattern:$0x75316420]  ;;  %s474_s24 = sadd.s32 %s3683_s18, %s3891_s21 }
  0x19   : > { %v577_v16 = vrot.slane %v563_v11, %v3897_v8  ;;  %v3467_v17 = vld.sshfl [vmem:[%s3903_s16 + $0xc] sm:$0x33 pattern:$0x75316420]  ;;  %v617_v20 = vrot.slane %v3466_v15, %v3897_v8  ;;  %s3457_s19 = sshll.u32 %s474_s24, 2  ;;  %s488_s26 = sadd.s32 %s3684_s22, %s3891_s21 }
  0x1a   : > { %v601_v18 = vrot.slane %v587_v13, %v3897_v8  ;;  %v3468_v19 = vld.sshfl [vmem:[%s3903_s16 + $0x10] sm:$0x33 pattern:$0x75316420]  ;;  %v625_v21 = vcombine.high %v3467_v17, %v3467_v17  ;;  %v632_v22 = vrot.slane %v3467_v17, %v3897_v8  ;;  %s3939_s28 = scalar_lea.vmem %s4672_s1, %s3457_s19  ;;  %s3459_s29 = sshll.u32 %s488_s26, 2 }
  0x1b   : > { %v1058_v23 = vcombine.low %v570_v12, %v577_v16  ;;  %v3489_v24 = vcombine.high %v570_v12, %v577_v16  ;;  %v649_v25 = vcombine.high %v3468_v19, %v3468_v19  ;;  %v656_v26 = vrot.slane %v3468_v19, %v3897_v8  ;;  %v3469_v31 = vld.sshfl [vmem:[%s3903_s16 + $0x14] sm:$0x1 pattern:$0x75316420]  ;;  %s3953_s17 = scalar_lea.vmem %s4673_s2, %s3459_s29 }
  0x1c   : > { %v1060_v27 = vcombine.low %v594_v14, %v601_v18  ;;  %v3490_v28 = vcombine.high %v594_v14, %v601_v18  ;;  %v639_v29 = vrot.slane %v625_v21, %v3897_v8  ;;  %v640_v30 = vcombine.high %v632_v22, %v632_v22  ;;  %v3470_v36 = vld.sshfl [vmem:[%s3903_s16 + $0x18] sm:$0x33 pattern:$0x75316420] }
  0x1d   : > { %v1068_v32 = vrot.slane %v1058_v23, %v3897_v8  ;;  %v1075_v33 = vrot.slane %v3489_v24, %v3897_v8  ;;  %v663_v34 = vrot.slane %v649_v25, %v3897_v8  ;;  %v664_v35 = vcombine.high %v656_v26, %v656_v26  ;;  %v3471_v41 = vld.sshfl [vmem:[%s3903_s16 + $0x1c] sm:$0x33 pattern:$0x75316420] }
  0x1e   : > { %v1082_v37 = vrot.slane %v1060_v27, %v3897_v8  ;;  %v1089_v38 = vrot.slane %v3490_v28, %v3897_v8  ;;  %v641_v39 = vcombine.high %v639_v29, %v639_v29  ;;  %v1107_v40 = vcombine.low %v617_v20, %v632_v22  ;;  %v3472_v54 = vld.sshfl [vmem:[%s3903_s16 + $0x20] sm:$0x1 pattern:$0x75316420] }
  0x1f   : > { %v1090_v42 = vcombine.low %v1068_v32, %v1075_v33  ;;  %v1108_v43 = vcombine.low %v639_v29, %v640_v30  ;;  %v1110_v44 = vcombine.low %v663_v34, %v664_v35  ;;  %v665_v45 = vcombine.high %v663_v34, %v663_v34  ;;  %v3473_v63 = vld.sshfl [vmem:[%s3903_s16 + $0x24] sm:$0x33 pattern:$0x75316420] }
  0x20   : > { %v1091_v46 = vcombine.low %v1082_v37, %v1089_v38  ;;  %v1109_v47 = vcombine.low %v641_v39, %v656_v26  ;;  %v1117_v48 = vrot.slane %v1107_v40, %v3897_v8  ;;  %v679_v49 = vrot.slane %v3469_v31, %v3897_v8  ;;  %v3474_v6 = vld.sshfl [vmem:[%s3903_s16 + $0x28] sm:$0x33 pattern:$0x75316420] }
  0x21   : > { %v1098_v50 = vrot.slane %v1090_v42, %v3897_v8  ;;  %v1124_v51 = vrot.slane %v1108_v43, %v3897_v8  ;;  %v1138_v52 = vrot.slane %v1110_v44, %v3897_v8  ;;  %v687_v53 = vcombine.high %v3470_v36, %v3470_v36  ;;  %v3475_v26 = vld.sshfl [vmem:[%s3903_s16 + $0x2c] sm:$0x1 pattern:$0x75316420] }
  0x22   : > { %v1105_v55 = vrot.slane %v1091_v46, %v3897_v8  ;;  %v1131_v56 = vrot.slane %v1109_v47, %v3897_v8  ;;  %v694_v57 = vrot.slane %v3470_v36, %v3897_v8  ;;  %v711_v58 = vcombine.high %v3471_v41, %v3471_v41  ;;  %v3476_v30 = vld.sshfl [vmem:[%s3903_s16 + $0x30] sm:$0x33 pattern:$0x75316420] }
  0x23   : > { %v1139_v59 = vcombine.low %v1117_v48, %v1124_v51  ;;  %v701_v60 = vrot.slane %v687_v53, %v3897_v8  ;;  %v718_v61 = vrot.slane %v3471_v41, %v3897_v8  ;;  %v1156_v62 = vcombine.low %v665_v45, %v679_v49  ;;  %v3477_v40 = vld.sshfl [vmem:[%s3903_s16 + $0x34] sm:$0x33 pattern:$0x75316420] }
  0x24   : > { %v1106_v1 = vcombine.low %v1098_v50, %v1105_v55  ;;  %v1140_v4 = vcombine.low %v1131_v56, %v1138_v52  ;;  %v725_v5 = vrot.slane %v711_v58, %v3897_v8  ;;  %v741_v9 = vrot.slane %v3472_v54, %v3897_v8  ;;  %v3479_v51 = vld.sshfl [vmem:[%s3903_s16 + $0x3c] sm:$0x33 pattern:$0x75316420] }
  0x25   : > { %v1147_v10 = vrot.slane %v1139_v59, %v3897_v8  ;;  %v1157_v11 = vcombine.low %v694_v57, %v701_v60  ;;  %v3491_v12 = vcombine.high %v694_v57, %v701_v60  ;;  %v1166_v13 = vrot.slane %v1156_v62, %v3897_v8  ;;  %v3478_v56 = vld.sshfl [vmem:[%s3903_s16 + $0x38] sm:$0x1 pattern:$0x75316420] }
  0x26   : > { %3611 = vmatmul.mubr.msk.bf16.vlgmr.msra.gmra.mxu0 %vm1499_vm2, %v1106_v1  ;;  %v1154_v14 = vrot.slane %v1140_v4, %v3897_v8  ;;  %v1159_v15 = vcombine.low %v718_v61, %v725_v5  ;;  %v749_v16 = vcombine.high %v3473_v63, %v3473_v63  ;;  %v756_v17 = vrot.slane %v3473_v63, %v3897_v8 }
  0x27   : > { %3614 = vmatprep.mubr.msk.bf16.mxu0 %vm3776_vm1, %v3775_v2  ;;  %v1173_v18 = vrot.slane %v1157_v11, %v3897_v8  ;;  %v1180_v19 = vrot.slane %v3491_v12, %v3897_v8  ;;  %v780_v20 = vrot.slane %v3474_v6, %v3897_v8  ;;  %v3492_v21 = vcombine.high %v718_v61, %v725_v5  ;;  %v3485_v11 = vld.sshfl [vmem:[%s3903_s16 + $0x54] sm:$0x33 pattern:$0x75316420] }
  0x28   : > { %v1155_v22 = vcombine.low %v1147_v10, %v1154_v14  ;;  %v1187_v23 = vrot.slane %v1159_v15, %v3897_v8  ;;  %v763_v24 = vrot.slane %v749_v16, %v3897_v8  ;;  %v764_v25 = vcombine.high %v756_v17, %v756_v17  ;;  %v3486_v15 = vld.sshfl [vmem:[%s3903_s16 + $0x58] sm:$0x33 pattern:$0x75316420] }
  0x29   : > { %v1188_v27 = vcombine.low %v1166_v13, %v1173_v18  ;;  %v1206_v28 = vcombine.low %v741_v9, %v756_v17  ;;  %v1215_v29 = vrot.slane %v3492_v21, %v3897_v8  ;;  %v773_v31 = vcombine.high %v3474_v6, %v3474_v6 }
  0x2a   : > { %v1189_v32 = vcombine.low %v1180_v19, %v1187_v23  ;;  %v765_v33 = vcombine.high %v763_v24, %v763_v24  ;;  %v1207_v34 = vcombine.low %v763_v24, %v764_v25  ;;  %v788_v35 = vcombine.high %v780_v20, %v780_v20  ;;  %v3487_v19 = vld.sshfl [vmem:[%s3903_s16 + $0x5c] sm:$0x1 pattern:$0x75316420] }
  0x2b   : > { %v1196_v36 = vrot.slane %v1188_v27, %v3897_v8  ;;  %v1222_v37 = vrot.slane %v1206_v28, %v3897_v8  ;;  %v787_v38 = vrot.slane %v773_v31, %v3897_v8  ;;  %v803_v39 = vrot.slane %v3475_v26, %v3897_v8 }
  0x2c   : > { %v1203_v41 = vrot.slane %v1189_v32, %v3897_v8  ;;  %v1208_v42 = vcombine.low %v765_v33, %v780_v20  ;;  %v1229_v43 = vrot.slane %v1207_v34, %v3897_v8  ;;  %v811_v44 = vcombine.high %v3476_v30, %v3476_v30 }
  0x2d   : > { %v1237_v45 = vcombine.low %v1215_v29, %v1222_v37  ;;  %v789_v46 = vcombine.high %v787_v38, %v787_v38  ;;  %v818_v47 = vrot.slane %v3476_v30, %v3897_v8  ;;  %v1254_v48 = vcombine.low %v787_v38, %v788_v35  ;;  %v3480_v29 = vld.sshfl [vmem:[%s3903_s16 + $0x40] sm:$0x33 pattern:$0x75316420] }
  0x2e   : > { %3615 = vmatmul.mubr.msk.bf16.gmra.mxu0 %vm1499_vm2, %v1155_v22  ;;  %v1236_v49 = vrot.slane %v1208_v42, %v3897_v8  ;;  %v825_v50 = vrot.slane %v811_v44, %v3897_v8  ;;  %v835_v52 = vcombine.high %v3477_v40, %v3477_v40  ;;  %v1204_v53 = vcombine.low %v1196_v36, %v1203_v41  ;;  %v3481_v41 = vld.sshfl [vmem:[%s3903_s16 + $0x44] sm:$0x1 pattern:$0x75316420] }
  0x2f   : > { %3618 = vmatprep.mubr.msk.bf16.mxu0 %vm3776_vm1, %v3775_v2  ;;  %v1255_v54 = vcombine.low %v789_v46, %v803_v39  ;;  %v1264_v55 = vrot.slane %v1254_v48, %v3897_v8  ;;  %v842_v57 = vrot.slane %v3477_v40, %v3897_v8  ;;  %v1245_v62 = vrot.slane %v1237_v45, %v3897_v8  ;;  %v3482_v46 = vld.sshfl [vmem:[%s3903_s16 + $0x48] sm:$0x33 pattern:$0x75316420] }
  0x30   : > { %v1238_v58 = vcombine.low %v1229_v43, %v1236_v49  ;;  %v1256_v59 = vcombine.low %v818_v47, %v825_v50  ;;  %v3493_v60 = vcombine.high %v818_v47, %v825_v50  ;;  %v849_v61 = vrot.slane %v835_v52, %v3897_v8 }
  0x31   : > { %v1271_v63 = vrot.slane %v1255_v54, %v3897_v8  ;;  %v873_v1 = vcombine.high %v3479_v51, %v3479_v51  ;;  %v880_v4 = vrot.slane %v3479_v51, %v3897_v8  ;;  %v865_v10 = vrot.slane %v3478_v56, %v3897_v8 }
  0x32   : > { %v1252_v5 = vrot.slane %v1238_v58, %v3897_v8  ;;  %v1278_v6 = vrot.slane %v1256_v59, %v3897_v8  ;;  %v1285_v9 = vrot.slane %v3493_v60, %v3897_v8  ;;  %v1303_v14 = vcombine.low %v842_v57, %v849_v61  ;;  %v3483_v60 = vld.sshfl [vmem:[%s3903_s16 + $0x4c] sm:$0x33 pattern:$0x75316420] }
  0x33   : > { %v887_v12 = vrot.slane %v873_v1, %v3897_v8  ;;  %v888_v13 = vcombine.high %v880_v4, %v880_v4  ;;  %v1286_v16 = vcombine.low %v1264_v55, %v1271_v63  ;;  %v3494_v18 = vcombine.high %v842_v57, %v849_v61 }
  0x34   : > { %v1287_v17 = vcombine.low %v1278_v6, %v1285_v9  ;;  %v997_v20 = vcombine.high %v3485_v11, %v3485_v11  ;;  %v1253_v21 = vcombine.low %v1245_v62, %v1252_v5  ;;  %v1305_v22 = vcombine.low %v865_v10, %v880_v4 }
  0x35   : > { %v4007_v23 = vrot.slane %v3485_v11, %v3897_v8  ;;  %v1021_v24 = vcombine.high %v3486_v15, %v3486_v15  ;;  %v1306_v25 = vcombine.low %v887_v12, %v888_v13  ;;  %v1313_v26 = vrot.slane %v1303_v14, %v3897_v8 }
  0x36   : > { %3619 = vmatmul.mubr.msk.bf16.gmra.mxu0 %vm1499_vm2, %v1204_v53  ;;  %v1011_v27 = vrot.slane %v997_v20, %v3897_v8  ;;  %v1028_v28 = vrot.slane %v3486_v15, %v3897_v8  ;;  %v1294_v30 = vrot.slane %v1286_v16, %v3897_v8  ;;  %v1051_v33 = vrot.slane %v3487_v19, %v3897_v8  ;;  %v3484_v15 = vld.sshfl [vmem:[%s3903_s16 + $0x50] sm:$0x1 pattern:$0x75316420]  ;;  %v3731_v19 = vld [vmem:[%s3939_s28] sm:$0xff]  }
  0x37   : > { %3622 = vmatprep.mubr.msk.bf16.mxu0 %vm3776_vm1, %v3775_v2  ;;  %v1012_v31 = vcombine.high %v4007_v23, %v4007_v23  ;;  %v1035_v32 = vrot.slane %v1021_v24, %v3897_v8  ;;  %v1301_v34 = vrot.slane %v1287_v17, %v3897_v8  ;;  %v1320_v35 = vrot.slane %v3494_v18, %v3897_v8 }
  0x38   : > { %v1013_v36 = vcombine.high %v1011_v27, %v1011_v27  ;;  %v1036_v37 = vcombine.high %v1028_v28, %v1028_v28  ;;  %v1327_v38 = vrot.slane %v1305_v22, %v3897_v8  ;;  %v897_v42 = vcombine.high %v3480_v29, %v3480_v29 }
  0x39   : > { %v1037_v39 = vcombine.high %v1035_v32, %v1035_v32  ;;  %v1450_v40 = vcombine.low %v1011_v27, %v1012_v31  ;;  %v1334_v43 = vrot.slane %v1306_v25, %v3897_v8  ;;  %v904_v47 = vrot.slane %v3480_v29, %v3897_v8 }
  0x3a   : > { %v1451_v44 = vcombine.low %v1013_v36, %v1028_v28  ;;  %v1452_v45 = vcombine.low %v1035_v32, %v1036_v37  ;;  %v889_v50 = vcombine.high %v887_v12, %v887_v12  ;;  %v911_v51 = vrot.slane %v897_v42, %v3897_v8  ;;  %v3733_v36 = vld [vmem:[%s3953_s17] sm:$0xff]  }
  0x3b   : > { %v1453_v48 = vcombine.low %v1037_v39, %v1051_v33  ;;  %v1460_v49 = vrot.slane %v1450_v40, %v3897_v8  ;;  %v912_v54 = vcombine.high %v904_v47, %v904_v47  ;;  %v927_v55 = vrot.slane %v3481_v41, %v3897_v8  ;;  %v3732_v33 = vld [vmem:[%s3939_s28 + $0x8] ss:$0 sps:$4 sm:$0x11]  }
  0x3c   : > { %v1467_v52 = vrot.slane %v1451_v44, %v3897_v8  ;;  %v1474_v53 = vrot.slane %v1452_v45, %v3897_v8  ;;  %v913_v57 = vcombine.high %v911_v51, %v911_v51  ;;  %v935_v58 = vcombine.high %v3482_v46, %v3482_v46  ;;  %v3734_v44 = vld [vmem:[%s3953_s17 + $0x8] ss:$0 sps:$4 sm:$0x11]  }
  0x3d   : > { %v1481_v56 = vrot.slane %v1453_v48, %v3897_v8  ;;  %v942_v59 = vrot.slane %v3482_v46, %v3897_v8  ;;  %v1335_v62 = vcombine.low %v1313_v26, %v1320_v35  ;;  %v1336_v63 = vcombine.low %v1327_v38, %v1334_v43 }
  0x3e   : > { %3623 = vmatmul.mubr.msk.bf16.gmra.mxu0 %vm1499_vm2, %v1253_v21  ;;  %v1482_v61 = vcombine.low %v1460_v49, %v1467_v52  ;;  %v949_v4 = vrot.slane %v935_v58, %v3897_v8  ;;  %v1352_v6 = vcombine.low %v889_v50, %v904_v47  ;;  %v1353_v9 = vcombine.low %v911_v51, %v912_v54  ;;  %v4086_v49 = vld [vmem:[%s4675_s4] ss:$0 sm:$0xff] }
  0x3f   : > { %3626 = vmatprep.mubr.msk.bf16.mxu0 %vm3776_vm1, %v3775_v2  ;;  %v1483_v1 = vcombine.low %v1474_v53, %v1481_v56  ;;  %v959_v10 = vcombine.high %v3483_v60, %v3483_v60  ;;  %v1302_v11 = vcombine.low %v1294_v30, %v1301_v34  ;;  %v1354_v13 = vcombine.low %v913_v57, %v927_v55 }
  0x40   : > { %v1490_v5 = vrot.slane %v1482_v61, %v3897_v8  ;;  %v1355_v14 = vcombine.low %v942_v59, %v949_v4  ;;  %v1343_v16 = vrot.slane %v1335_v62, %v3897_v8  ;;  %v1350_v17 = vrot.slane %v1336_v63, %v3897_v8 }
  0x41   : > { %v1497_v12 = vrot.slane %v1483_v1, %v3897_v8  ;;  %v1362_v20 = vrot.slane %v1352_v6, %v3897_v8  ;;  %v1369_v21 = vrot.slane %v1353_v9, %v3897_v8  ;;  %v966_v22 = vrot.slane %v3483_v60, %v3897_v8 }
  0x42   : > { %v973_v24 = vrot.slane %v959_v10, %v3897_v8  ;;  %v1376_v25 = vrot.slane %v1354_v13, %v3897_v8  ;;  %v1383_v26 = vrot.slane %v1355_v14, %v3897_v8  ;;  %v989_v27 = vrot.slane %v3484_v15, %v3897_v8 }
  0x43   : > { %v1498_v18 = vcombine.low %v1490_v5, %v1497_v12  ;;  %v1384_v28 = vcombine.low %v1362_v20, %v1369_v21  ;;  %v3495_v29 = vcombine.high %v942_v59, %v949_v4  ;;  %v1351_v31 = vcombine.low %v1343_v16, %v1350_v17 }
  0x44   : > { %v1402_v30 = vcombine.low %v966_v22, %v973_v24  ;;  %v1385_v32 = vcombine.low %v1376_v25, %v1383_v26  ;;  %v3496_v34 = vcombine.high %v966_v22, %v973_v24  ;;  %v1404_v35 = vcombine.low %v989_v27, %v4007_v23 }
  0x45   : > { %3643 = vmatmul.mubr.msk.bf16.vlgmr.msra.gmra.mxu1 %vm1499_vm2, %v1498_v18  ;;  %v1392_v37 = vrot.slane %v1384_v28, %v3897_v8  ;;  %v1411_v38 = vrot.slane %v3495_v29, %v3897_v8 }
  0x46   : > { %3627 = vmatmul.mubr.msk.bf16.gmra.mxu0 %vm1499_vm2, %v1302_v11  ;;  %3647 = vmatpush3.bf16.msra.mxu1 %v3874_v3  ;;  %v1418_v39 = vrot.slane %v1402_v30, %v3897_v8  ;;  %v1425_v40 = vrot.slane %v3496_v34, %v3897_v8  ;;  %v1432_v41 = vrot.slane %v1404_v35, %v3897_v8 }
  0x47   : > { %3630 = vmatprep.mubr.msk.bf16.mxu0 %vm3776_vm1, %v3775_v2  ;;  %3648 = vmatprep.mubr.msk.bf16.mxu1 %vm1499_vm2, %v3731_v19 }
  0x48   : > { %3679 = vmatprep.subr.msk.bf16.mxu1 %vm1527_vm0, %v3868_v0  ;;  %v1399_v0 = vrot.slane %v1385_v32, %v3897_v8  ;;  %v1433_v42 = vcombine.low %v1411_v38, %v1418_v39  ;;  %v1434_v43 = vcombine.low %v1425_v40, %v1432_v41 }
  0x4a   : > { %v1400_v23 = vcombine.low %v1392_v37, %v1399_v0  ;;  %v1441_v45 = vrot.slane %v1433_v42, %v3897_v8  ;;  %v1448_v46 = vrot.slane %v1434_v43, %v3897_v8 }
  0x4c   : > { %v1449_v47 = vcombine.low %v1441_v45, %v1448_v46 }
  0x4d   : > { %3649 = vmatmul.mubr.msk.bf16.vlgmr.msra.gmra.mxu1 %vm1499_vm2, %v3732_v33 }
  0x4e   : > { %3631 = vmatmul.mubr.msk.bf16.gmra.mxu0 %vm1499_vm2, %v1351_v31  ;;  %3653 = vmatpush3.bf16.msra.mxu1 %v3874_v3  ;;  %v3778_v3 = vmov 1983009808  }
  0x4f   : > { %3634 = vmatprep.mubr.msk.bf16.mxu0 %vm3776_vm1, %v3775_v2  ;;  %3654 = vmatprep.mubr.msk.bf16.mxu1 %vm1499_vm2, %v3733_v36  ;;  %v1692_v48 = vunpack.c.l.s4 %v3778_v3 }
  0x51   : > { %v1693_v50 = vunpack.c.0.s8 %v1692_v48 }
  0x53   : > { %v4090_v53 = vsub.s32 %v1693_v50, %v3887_v7 }
  0x55   : > { %3655 = vmatmul.mubr.msk.bf16.vlgmr.msra.gmra.mxu1 %vm1499_vm2, %v3734_v44 }
  0x56   : > { %3635 = vmatmul.mubr.msk.bf16.gmra.mxu0 %vm1499_vm2, %v1400_v23 }
  0x57   : > { %3638 = vmatprep.mubr.msk.bf16.mxu0 %vm3776_vm1, %v3775_v2 }
  0x5e   : > { %3639 = vmatmul.mubr.msk.bf16.gmra.mxu0 %vm1499_vm2, %v1449_v47 }
  0xe6   : > { %v1565_v51 = vpop.f32.mrf.mxu0 }
  0xe7   : > { %v1566_v52 = vadd.f32 %v4086_v49, %v1565_v51 }
  0xe8   : > { %v3612_v8 = vpop.f32.mrf.mxu0 }
  0xe9   : > { %v1636_v54 = vmax.f32 %v1566_v52, 0.0 }
  0xea   : > { %v1568_v55 = vpop.f32.mrf.mxu0 }
  0xeb   : > { %v1654_v56 = vmin.f32 %v1636_v54, 6.0  ;;  %v1569_v57 = vadd.f32 %v4086_v49, %v1568_v55 }
  0xec   : > { %v3613_v58 = vpop.f32.mrf.mxu0 }
  0xed   : > { %v1690_v59 = vcombine.high %v1654_v56, %v1654_v56  ;;  %v1697_v60 = vrot.slane %v1654_v56, %v4090_v53  ;;  %v1637_v61 = vmax.f32 %v1569_v57, 0.0 }
  0xee   : > { %v1573_v62 = vpop.f32.mrf.mxu0 }
  0xef   : > { %v1704_v63 = vrot.slane %v1690_v59, %v4090_v53  ;;  %v1705_v1 = vcombine.high %v1697_v60, %v1697_v60  ;;  %v1655_v4 = vmin.f32 %v1637_v61, 6.0  ;;  %v1574_v5 = vadd.f32 %v4086_v49, %v1573_v62 }
  0xf0   : > { %v3616_v6 = vpop.f32.mrf.mxu0 }
  0xf1   : > { %v1706_v9 = vcombine.high %v1704_v63, %v1704_v63  ;;  %v1996_v10 = vcombine.low %v1697_v60, %v1705_v1  ;;  %v1707_v11 = vcombine.high %v1655_v4, %v1655_v4  ;;  %v1714_v12 = vrot.slane %v1655_v4, %v4090_v53 }
  0xf2   : > { %v1638_v13 = vmax.f32 %v1574_v5, 0.0  ;;  %v1576_v14 = vpop.f32.mrf.mxu0 }
  0xf3   : > { %v1997_v15 = vcombine.low %v1704_v63, %v1706_v9  ;;  %v1721_v16 = vrot.slane %v1707_v11, %v4090_v53  ;;  %v1722_v17 = vcombine.high %v1714_v12, %v1714_v12  ;;  %v1577_v19 = vadd.f32 %v4086_v49, %v1576_v14 }
  0xf4   : > { %v1656_v18 = vmin.f32 %v1638_v13, 6.0  ;;  %v3617_v20 = vpop.f32.mrf.mxu0  ;;  %v2004_v22 = vrot.slane %v1996_v10, %v4090_v53 }
  0xf5   : > { %v2011_v21 = vrot.slane %v1997_v15, %v4090_v53  ;;  %v1723_v24 = vcombine.high %v1721_v16, %v1721_v16  ;;  %v2013_v25 = vcombine.low %v1714_v12, %v1722_v17  ;;  %v1639_v28 = vmax.f32 %v1577_v19, 0.0 }
  0xf6   : > { %v1724_v26 = vcombine.high %v1656_v18, %v1656_v18  ;;  %v1731_v27 = vrot.slane %v1656_v18, %v4090_v53  ;;  %v1581_v29 = vpop.f32.mrf.mxu0 }
  0xf7   : > { %v2012_v30 = vcombine.low %v2004_v22, %v2011_v21  ;;  %v2014_v31 = vcombine.low %v1721_v16, %v1723_v24  ;;  %v1582_v32 = vadd.f32 %v4086_v49, %v1581_v29  ;;  %v1657_v36 = vmin.f32 %v1639_v28, 6.0 }
  0xf8   : > { %v1738_v33 = vrot.slane %v1724_v26, %v4090_v53  ;;  %v1739_v34 = vcombine.high %v1731_v27, %v1731_v27  ;;  %v2036_v35 = vrot.slane %v1731_v27, %v4090_v53  ;;  %v3620_v37 = vpop.f32.mrf.mxu0  ;;  %v2021_v39 = vrot.slane %v2013_v25, %v4090_v53 }
  0xf9   : > { %2349 = vst.msk [vmem:[#allocation2] sm:$0xff] %vm2348_vm3, %v2012_v30  ;;  %v2028_v38 = vrot.slane %v2014_v31, %v4090_v53  ;;  %v1640_v0 = vmax.f32 %v1582_v32, 0.0  ;;  %v1741_v23 = vcombine.high %v1657_v36, %v1657_v36  ;;  %v1748_v42 = vrot.slane %v1657_v36, %v4090_v53 }
  0xfa   : > { %2525 = vst.msk [vmem:[#allocation2] sm:$0x1] %vm2524_vm5, %v3775_v2  ;;  %v2037_v40 = vcombine.low %v1739_v34, %v1738_v33  ;;  %v1740_v41 = vcombine.high %v1738_v33, %v1738_v33  ;;  %v1584_v43 = vpop.f32.mrf.mxu0 }
  0xfb   : > { %2352 = vst.msk [vmem:[#allocation2 + $0x10] sm:$0x3] %vm2351_vm4, %v2036_v35  ;;  %v2029_v44 = vcombine.low %v2021_v39, %v2028_v38  ;;  %v1658_v45 = vmin.f32 %v1640_v0, 6.0  ;;  %v1585_v46 = vadd.f32 %v4086_v49, %v1584_v43  ;;  %v1755_v47 = vrot.slane %v1741_v23, %v4090_v53 }
  0xfc   : > { %2535 = vst.msk [vmem:[#allocation2 + $0x11] sm:$0x1] %vm2524_vm5, %v3775_v2  ;;  %v1756_v3 = vcombine.high %v1748_v42, %v1748_v42  ;;  %v2038_v48 = vcombine.low %v1740_v41, %v1748_v42  ;;  %v3621_v50 = vpop.f32.mrf.mxu0  ;;  %v2045_v54 = vrot.slane %v2037_v40, %v4090_v53 }
  0xfd   : > { %2350 = vst.msk [vmem:[#allocation2 + $0x8] sm:$0xff] %vm2348_vm3, %v2029_v44  ;;  %v1758_v51 = vcombine.high %v1658_v45, %v1658_v45  ;;  %v1765_v52 = vrot.slane %v1658_v45, %v4090_v53  ;;  %v1641_v8 = vmax.f32 %v1585_v46, 0.0  ;;  %v1757_v57 = vcombine.high %v1755_v47, %v1755_v47 }
  0xfe   : > { %v2054_v55 = vcombine.low %v1756_v3, %v1755_v47  ;;  %v2052_v56 = vrot.slane %v2038_v48, %v4090_v53  ;;  %v1589_v58 = vpop.f32.mrf.mxu0 }
  0xff   : > { %v1772_v59 = vrot.slane %v1758_v51, %v4090_v53  ;;  %v1773_v60 = vcombine.high %v1765_v52, %v1765_v52  ;;  %v1659_v61 = vmin.f32 %v1641_v8, 6.0  ;;  %v1590_v62 = vadd.f32 %v4086_v49, %v1589_v58 }
 0x100   : > { %v2053_v63 = vcombine.low %v2045_v54, %v2052_v56  ;;  %v2055_v1 = vcombine.low %v1757_v57, %v1765_v52  ;;  %v3624_v4 = vpop.f32.mrf.mxu0  ;;  %v2062_v11 = vrot.slane %v2054_v55, %v4090_v53 }
 0x101   : > { %v1774_v5 = vcombine.high %v1772_v59, %v1772_v59  ;;  %v2077_v6 = vrot.slane %v1773_v60, %v4090_v53  ;;  %v1775_v9 = vcombine.high %v1659_v61, %v1659_v61  ;;  %v1782_v10 = vrot.slane %v1659_v61, %v4090_v53 }
 0x102   : > { %2353 = vst.msk [vmem:[#allocation2 + $0x18] sm:$0xff] %vm2348_vm3, %v2053_v63  ;;  %v2069_v12 = vrot.slane %v2055_v1, %v4090_v53  ;;  %v1642_v13 = vmax.f32 %v1590_v62, 0.0  ;;  %v1592_v14 = vpop.f32.mrf.mxu0 }
 0x103   : > { %2526 = vst.msk [vmem:[#allocation2 + $0x18] sm:$0x1] %vm2524_vm5, %v3775_v2  ;;  %v2078_v15 = vcombine.low %v1772_v59, %v1774_v5  ;;  %v1789_v16 = vrot.slane %v1775_v9, %v4090_v53  ;;  %v1790_v17 = vcombine.high %v1782_v10, %v1782_v10  ;;  %v1593_v18 = vadd.f32 %v4086_v49, %v1592_v14 }
 0x104   : > { %2355 = vst.msk [vmem:[#allocation2 + $0x28] sm:$0x3] %vm2351_vm4, %v2077_v6  ;;  %v2070_v19 = vcombine.low %v2062_v11, %v2069_v12  ;;  %v1660_v20 = vmin.f32 %v1642_v13, 6.0  ;;  %v3625_v21 = vpop.f32.mrf.mxu0 }
 0x105   : > { %2536 = vst.msk [vmem:[#allocation2 + $0x29] sm:$0x1] %vm2524_vm5, %v3775_v2  ;;  %v1791_v22 = vcombine.high %v1789_v16, %v1789_v16  ;;  %v2079_v24 = vcombine.low %v1782_v10, %v1790_v17  ;;  %v1643_v25 = vmax.f32 %v1593_v18, 0.0  ;;  %v1629_v29 = vpop.f32.mrf.mxu1  ;;  %v2086_v30 = vrot.slane %v2078_v15, %v4090_v53 }
 0x106   : > { %2354 = vst.msk [vmem:[#allocation2 + $0x20] sm:$0xff] %vm2348_vm3, %v2070_v19  ;;  %v1792_v26 = vcombine.high %v1660_v20, %v1660_v20  ;;  %v1799_v27 = vrot.slane %v1660_v20, %v4090_v53  ;;  %v1597_v28 = vpop.f32.mrf.mxu0  ;;  %v1630_v38 = vadd.f32 %v4086_v49, %v1629_v29 }
 0x107   : > { %v2093_v31 = vrot.slane %v2079_v24, %v4090_v53  ;;  %v1661_v32 = vmin.f32 %v1643_v25, 6.0  ;;  %v1598_v33 = vadd.f32 %v4086_v49, %v1597_v28  ;;  %v2095_v34 = vcombine.low %v1789_v16, %v1791_v22  ;;  %v3644_v39 = vpop.f32.mrf.mxu1 }
 0x108   : > { %v1806_v35 = vrot.slane %v1792_v26, %v4090_v53  ;;  %v1807_v36 = vcombine.high %v1799_v27, %v1799_v27  ;;  %v3628_v37 = vpop.f32.mrf.mxu0  ;;  %v1652_v50 = vmax.f32 %v1630_v38, 0.0 }
 0x109   : > { %v2094_v0 = vcombine.low %v2086_v30, %v2093_v31  ;;  %v1809_v40 = vcombine.high %v1661_v32, %v1661_v32  ;;  %v1816_v41 = vrot.slane %v1661_v32, %v4090_v53  ;;  %v1644_v44 = vmax.f32 %v1598_v33, 0.0  ;;  %v1632_v46 = vpop.f32.mrf.mxu1 }
 0x10a   : > { %v2118_v23 = vrot.slane %v1806_v35, %v4090_v53  ;;  %v2096_v42 = vcombine.low %v1799_v27, %v1807_v36  ;;  %v1808_v43 = vcombine.high %v1806_v35, %v1806_v35  ;;  %v1600_v45 = vpop.f32.mrf.mxu0  ;;  %v2103_v51 = vrot.slane %v2095_v34, %v4090_v53 }
 0x10b   : > { %2356 = vst.msk [vmem:[#allocation2 + $0x30] sm:$0xff] %vm2348_vm3, %v2094_v0  ;;  %v1823_v47 = vrot.slane %v1809_v40, %v4090_v53  ;;  %v1824_v3 = vcombine.high %v1816_v41, %v1816_v41  ;;  %v1601_v48 = vadd.f32 %v4086_v49, %v1600_v45  ;;  %v1662_v54 = vmin.f32 %v1644_v44, 6.0  ;;  %v3645_v56 = vpop.f32.mrf.mxu1 }
 0x10c   : > { %2527 = vst.msk [vmem:[#allocation2 + $0x30] sm:$0x1] %vm2524_vm5, %v3775_v2  ;;  %v2110_v52 = vrot.slane %v2096_v42, %v4090_v53  ;;  %v2119_v8 = vcombine.low %v1808_v43, %v1816_v41  ;;  %v3629_v55 = vpop.f32.mrf.mxu0  ;;  %v1670_v60 = vmin.f32 %v1652_v50, 6.0  ;;  %v1633_v16 = vadd.f32 %v4086_v49, %v1632_v46 }
 0x10d   : > { %2358 = vst.msk [vmem:[#allocation2 + $0x40] sm:$0x3] %vm2351_vm4, %v2118_v23  ;;  %v2120_v57 = vcombine.low %v1824_v3, %v1823_v47  ;;  %v1825_v58 = vcombine.high %v1823_v47, %v1823_v47  ;;  %v1645_v59 = vmax.f32 %v1601_v48, 0.0  ;;  %v1826_v63 = vcombine.high %v1662_v54, %v1662_v54  ;;  %v3650_v5 = vpop.f32.mrf.mxu1 }
 0x10e   : > { %2537 = vst.msk [vmem:[#allocation2 + $0x41] sm:$0x1] %vm2524_vm5, %v3775_v2  ;;  %v2111_v61 = vcombine.low %v2103_v51, %v2110_v52  ;;  %v2127_v62 = vrot.slane %v2119_v8, %v4090_v53  ;;  %v1833_v1 = vrot.slane %v1662_v54, %v4090_v53  ;;  %v1605_v4 = vpop.f32.mrf.mxu0  ;;  %v1962_v11 = vcombine.high %v1670_v60, %v1670_v60 }
 0x10f   : > { %v2134_v6 = vrot.slane %v2120_v57, %v4090_v53  ;;  %v1663_v9 = vmin.f32 %v1645_v59, 6.0  ;;  %v1606_v10 = vadd.f32 %v4086_v49, %v1605_v4  ;;  %v1840_v12 = vrot.slane %v1826_v63, %v4090_v53  ;;  %v4160_v17 = vpop.f32.mrf.mxu1 }
 0x110   : > { %2357 = vst.msk [vmem:[#allocation2 + $0x38] sm:$0xff] %vm2348_vm3, %v2111_v61  ;;  %v1841_v13 = vcombine.high %v1833_v1, %v1833_v1  ;;  %v2136_v14 = vcombine.low %v1825_v58, %v1833_v1  ;;  %v3632_v15 = vpop.f32.mrf.mxu0  ;;  %v4164_v26 = vrot.slane %v1962_v11, %v4090_v53  ;;  %v4167_v27 = vrot.slane %v1670_v60, %v4090_v53 }
 0x111   : > { %v2135_v18 = vcombine.low %v2127_v62, %v2134_v6  ;;  %v1843_v19 = vcombine.high %v1663_v9, %v1663_v9  ;;  %v1850_v20 = vrot.slane %v1663_v9, %v4090_v53  ;;  %v1646_v21 = vmax.f32 %v1606_v10, 0.0  ;;  %v3651_v28 = vpop.f32.mrf.mxu1 }
 0x112   : > { %v1842_v22 = vcombine.high %v1840_v12, %v1840_v12  ;;  %v2137_v24 = vcombine.low %v1841_v13, %v1840_v12  ;;  %v1608_v25 = vpop.f32.mrf.mxu0  ;;  %v2144_v35 = vrot.slane %v2136_v14, %v4090_v53  ;;  %v1977_v42 = vcombine.high %v4167_v27, %v4167_v27 }
 0x113   : > { %2359 = vst.msk [vmem:[#allocation2 + $0x48] sm:$0xff] %vm2348_vm3, %v2135_v18  ;;  %v1857_v29 = vrot.slane %v1843_v19, %v4090_v53  ;;  %v1858_v30 = vcombine.high %v1850_v20, %v1850_v20  ;;  %v1664_v31 = vmin.f32 %v1646_v21, 6.0  ;;  %v1609_v32 = vadd.f32 %v4086_v49, %v1608_v25  ;;  %v4177_v37 = vpop.f32.mrf.mxu1 }
 0x114   : > { %2528 = vst.msk [vmem:[#allocation2 + $0x48] sm:$0x1] %vm2524_vm5, %v3775_v2  ;;  %v2159_v33 = vrot.slane %v1842_v22, %v4090_v53  ;;  %v2151_v34 = vrot.slane %v2137_v24, %v4090_v53  ;;  %v3633_v36 = vpop.f32.mrf.mxu0  ;;  %v1653_v44 = vmax.f32 %v1633_v16, 0.0  ;;  %v1978_v48 = vcombine.high %v4164_v26, %v4164_v26 }
 0x115   : > { %v1859_v38 = vcombine.high %v1857_v29, %v1857_v29  ;;  %v2160_v39 = vcombine.low %v1850_v20, %v1858_v30  ;;  %v1860_v0 = vcombine.high %v1664_v31, %v1664_v31  ;;  %v1867_v40 = vrot.slane %v1664_v31, %v4090_v53  ;;  %v4183_v45 = vpop.f32.mrf.mxu1 }
 0x116   : > { %2361 = vst.msk [vmem:[#allocation2 + $0x58] sm:$0x3] %vm2351_vm4, %v2159_v33  ;;  %v2152_v41 = vcombine.low %v2144_v35, %v2151_v34  ;;  %v1647_v23 = vmax.f32 %v1609_v32, 0.0  ;;  %v1613_v43 = vpop.f32.mrf.mxu0  ;;  %v1671_v8 = vmin.f32 %v1653_v44, 6.0  ;;  %v2434_v59 = vadd.f32 %v3650_v5, %v4086_v49 }
 0x117   : > { %2538 = vst.msk [vmem:[#allocation2 + $0x59] sm:$0x1] %vm2524_vm5, %v3775_v2  ;;  %v2161_v46 = vcombine.low %v1857_v29, %v1859_v38  ;;  %v1874_v47 = vrot.slane %v1860_v0, %v4090_v53  ;;  %v1875_v3 = vcombine.high %v1867_v40, %v1867_v40  ;;  %v2168_v50 = vrot.slane %v2160_v39, %v4090_v53  ;;  %v4193_v55 = vpop.f32.mrf.mxu1 }
 0x118   : > { %2360 = vst.msk [vmem:[#allocation2 + $0x50] sm:$0xff] %vm2348_vm3, %v2152_v41  ;;  %v1665_v51 = vmin.f32 %v1647_v23, 6.0  ;;  %v1614_v52 = vadd.f32 %v4086_v49, %v1613_v43  ;;  %v3636_v54 = vpop.f32.mrf.mxu0  ;;  %v1979_v63 = vcombine.high %v1671_v8, %v1671_v8  ;;  %v1986_v11 = vrot.slane %v1671_v8, %v4090_v53 }
 0x119   : > { %v2175_v56 = vrot.slane %v2161_v46, %v4090_v53  ;;  %v1876_v57 = vcombine.high %v1874_v47, %v1874_v47  ;;  %v2177_v58 = vcombine.low %v1867_v40, %v1875_v3  ;;  %v3657_v4 = vpop.f32.mrf.mxu1  ;;  %v2441_v41 = vmax.f32 %v2434_v59, 0.0 }
 0x11a   : > { %v1877_v60 = vcombine.high %v1665_v51, %v1665_v51  ;;  %v1884_v61 = vrot.slane %v1665_v51, %v4090_v53  ;;  %v1648_v62 = vmax.f32 %v1614_v52, 0.0  ;;  %v1616_v1 = vpop.f32.mrf.mxu0  ;;  %v1993_v18 = vrot.slane %v1979_v63, %v4090_v53 }
 0x11b   : > { %v2176_v6 = vcombine.low %v2168_v50, %v2175_v56  ;;  %v2178_v9 = vcombine.low %v1874_v47, %v1876_v57  ;;  %v2185_v10 = vrot.slane %v2177_v58, %v4090_v53  ;;  %v1994_v19 = vcombine.high %v1986_v11, %v1986_v11  ;;  %v2503_v52 = vpop.f32.mrf.mxu1 }
 0x11c   : > { %v1891_v12 = vrot.slane %v1877_v60, %v4090_v53  ;;  %v1892_v13 = vcombine.high %v1884_v61, %v1884_v61  ;;  %v2200_v14 = vrot.slane %v1884_v61, %v4090_v53  ;;  %v1666_v15 = vmin.f32 %v1648_v62, 6.0  ;;  %v3637_v5 = vpop.f32.mrf.mxu0 }
 0x11d   : > { %2362 = vst.msk [vmem:[#allocation2 + $0x60] sm:$0xff] %vm2348_vm3, %v2176_v6  ;;  %v2192_v16 = vrot.slane %v2178_v9, %v4090_v53  ;;  %v2300_v20 = vcombine.low %v1978_v48, %v1986_v11  ;;  %v1995_v30 = vcombine.high %v1993_v18, %v1993_v18  ;;  %v2301_v31 = vcombine.low %v1994_v19, %v1993_v18 }
 0x11e   : > { %2529 = vst.msk [vmem:[#allocation2 + $0x60] sm:$0x1] %vm2524_vm5, %v3775_v2  ;;  %v2201_v21 = vcombine.low %v1892_v13, %v1891_v12  ;;  %v1893_v22 = vcombine.high %v1891_v12, %v1891_v12  ;;  %v1894_v24 = vcombine.high %v1666_v15, %v1666_v15  ;;  %v1901_v25 = vrot.slane %v1666_v15, %v4090_v53  ;;  %v1621_v28 = vpop.f32.mrf.mxu0 }
 0x11f   : > { %2364 = vst.msk [vmem:[#allocation2 + $0x70] sm:$0x3] %vm2351_vm4, %v2200_v14  ;;  %v2193_v29 = vcombine.low %v2185_v10, %v2192_v16  ;;  %v2308_v32 = vrot.slane %v2300_v20, %v4090_v53  ;;  %v2323_v39 = vrot.slane %v1995_v30, %v4090_v53  ;;  %v2315_v0 = vrot.slane %v2301_v31, %v4090_v53 }
 0x120   : > { %2539 = vst.msk [vmem:[#allocation2 + $0x71] sm:$0x1] %vm2524_vm5, %v3775_v2  ;;  %v2209_v33 = vrot.slane %v2201_v21, %v4090_v53  ;;  %v1908_v34 = vrot.slane %v1894_v24, %v4090_v53  ;;  %v1909_v35 = vcombine.high %v1901_v25, %v1901_v25  ;;  %v2202_v36 = vcombine.low %v1893_v22, %v1901_v25  ;;  %v3640_v38 = vpop.f32.mrf.mxu0 }
 0x121   : > { %2363 = vst.msk [vmem:[#allocation2 + $0x68] sm:$0xff] %vm2348_vm3, %v2193_v29  ;;  %v1617_v40 = vadd.f32 %v4086_v49, %v1616_v1  ;;  %v2426_v46 = vadd.f32 %v4086_v49, %v4160_v17  ;;  %v2316_v3 = vcombine.low %v2308_v32, %v2315_v0  ;;  %v2444_v50 = vmin.f32 %v2441_v41, 6.0 }
 0x122   : > { %v2218_v23 = vcombine.low %v1909_v35, %v1908_v34  ;;  %v2216_v43 = vrot.slane %v2202_v36, %v4090_v53  ;;  %v1910_v44 = vcombine.high %v1908_v34, %v1908_v34  ;;  %v1624_v47 = vpop.f32.mrf.mxu0  ;;  %2373 = vst.msk [vmem:[#allocation2 + $0xb8] sm:$0x3] %vm2351_vm4, %v2323_v39  ;;  %v1622_v51 = vadd.f32 %v4086_v49, %v1621_v28 }
 0x123   : > { %v1649_v48 = vmax.f32 %v1617_v40, 0.0  ;;  %2542 = vst.msk [vmem:[#allocation2 + $0xb9] sm:$0x1] %vm2524_vm5, %v3775_v2  ;;  %v2439_v56 = vmax.f32 %v2426_v46, 0.0  ;;  %v2429_v57 = vadd.f32 %v4086_v49, %v4177_v37  ;;  %v1625_v60 = vadd.f32 %v4086_v49, %v1624_v47 }
 0x124   : > { %v2226_v8 = vrot.slane %v2218_v23, %v4090_v53  ;;  %v2217_v54 = vcombine.low %v2209_v33, %v2216_v43  ;;  %v3641_v17 = vpop.f32.mrf.mxu0  ;;  %2372 = vst.msk [vmem:[#allocation2 + $0xb0] sm:$0xff] %vm2348_vm3, %v2316_v3  ;;  %v1650_v59 = vmax.f32 %v1622_v51, 0.0  ;;  %v2509_v61 = vadd.f32 %v4183_v45, %v4086_v49 }
 0x125   : > { %v1667_v58 = vmin.f32 %v1649_v48, 6.0  ;;  %2448 = vst.msk [vmem:[#allocation2 + $0xd0] sm:$0x3] %vm2351_vm4, %v2444_v50  ;;  %v2442_v62 = vmin.f32 %v2439_v56, 6.0  ;;  %v2440_v63 = vmax.f32 %v2429_v57, 0.0  ;;  %v2501_v37 = vadd.f32 %v4086_v49, %v4193_v55 }
 0x126   : > { %2365 = vst.msk [vmem:[#allocation2 + $0x78] sm:$0xff] %vm2348_vm3, %v2217_v54  ;;  %v2504_v1 = vadd.f32 %v4086_v49, %v2503_v52  ;;  %v1668_v9 = vmin.f32 %v1650_v59, 6.0  ;;  %v1651_v45 = vmax.f32 %v1625_v60, 0.0  ;;  %v2516_v11 = vmax.f32 %v2509_v61, 0.0 }
 0x127   : > { %2543 = vst.msk [vmem:[#allocation2 + $0xd1] sm:$0x1] %vm2524_vm5, %v3775_v2  ;;  %2530 = vst.msk [vmem:[#allocation2 + $0x78] sm:$0x1] %vm2524_vm5, %v3775_v2  ;;  %v1911_v4 = vcombine.high %v1667_v58, %v1667_v58  ;;  %v1918_v6 = vrot.slane %v1667_v58, %v4090_v53  ;;  %v2443_v10 = vmin.f32 %v2440_v63, 6.0  ;;  %v2514_v12 = vmax.f32 %v2501_v37, 0.0 }
 0x128   : > { %2446 = vst.msk [vmem:[#allocation2 + $0xc0] sm:$0xff] %vm2348_vm3, %v2442_v62  ;;  %v2515_v13 = vmax.f32 %v2504_v1, 0.0  ;;  %v1928_v49 = vcombine.high %v1668_v9, %v1668_v9  ;;  %v1935_v5 = vrot.slane %v1668_v9, %v4090_v53  ;;  %v1669_v16 = vmin.f32 %v1651_v45, 6.0 }
 0x129   : > { %v1925_v14 = vrot.slane %v1911_v4, %v4090_v53  ;;  %v1926_v15 = vcombine.high %v1918_v6, %v1918_v6  ;;  %v2219_v55 = vcombine.low %v1910_v44, %v1918_v6  ;;  %2533 = vst.msk [vmem:[#allocation2 + $0xc0] sm:$0x1] %vm2524_vm5, %v3775_v2  ;;  %v2519_v18 = vmin.f32 %v2516_v11, 6.0 }
 0x12a   : > { %2447 = vst.msk [vmem:[#allocation2 + $0xc8] sm:$0xff] %vm2348_vm3, %v2443_v10  ;;  %v2517_v19 = vmin.f32 %v2514_v12, 6.0  ;;  %v1942_v24 = vrot.slane %v1928_v49, %v4090_v53  ;;  %v1943_v25 = vcombine.high %v1935_v5, %v1935_v5  ;;  %v1945_v28 = vcombine.high %v1669_v16, %v1669_v16 }
 0x12b   : > { %v1927_v20 = vcombine.high %v1925_v14, %v1925_v14  ;;  %v2241_v21 = vrot.slane %v1926_v15, %v4090_v53  ;;  %v2233_v22 = vrot.slane %v2219_v55, %v4090_v53  ;;  %v1952_v29 = vrot.slane %v1669_v16, %v4090_v53  ;;  %2523 = vst.msk [vmem:[#allocation2 + $0xe8] sm:$0x3] %vm2351_vm4, %v2519_v18 }
 0x12c   : > { %2521 = vst.msk [vmem:[#allocation2 + $0xd8] sm:$0xff] %vm2348_vm3, %v2517_v19  ;;  %v2518_v30 = vmin.f32 %v2515_v13, 6.0  ;;  %v1944_v33 = vcombine.high %v1942_v24, %v1942_v24  ;;  %v2243_v34 = vcombine.low %v1935_v5, %v1943_v25  ;;  %v1959_v35 = vrot.slane %v1945_v28, %v4090_v53 }
 0x12d   : > { %v2242_v31 = vcombine.low %v1925_v14, %v1927_v20  ;;  %2367 = vst.msk [vmem:[#allocation2 + $0x88] sm:$0x3] %vm2351_vm4, %v2241_v21  ;;  %v2234_v32 = vcombine.low %v2226_v8, %v2233_v22  ;;  %v1960_v36 = vcombine.high %v1952_v29, %v1952_v29  ;;  %v2284_v38 = vcombine.low %v1977_v42, %v4164_v26 }
 0x12e   : > { %2544 = vst.msk [vmem:[#allocation2 + $0xe9] sm:$0x1] %vm2524_vm5, %v3775_v2  ;;  %2534 = vst.msk [vmem:[#allocation2 + $0xd8] sm:$0x1] %vm2524_vm5, %v3775_v2  ;;  %v2259_v0 = vcombine.low %v1942_v24, %v1944_v33  ;;  %v2257_v40 = vrot.slane %v2243_v34, %v4090_v53  ;;  %v1961_v41 = vcombine.high %v1959_v35, %v1959_v35 }
 0x12f   : > { %2540 = vst.msk [vmem:[#allocation2 + $0x89] sm:$0x1] %vm2524_vm5, %v3775_v2  ;;  %v2250_v39 = vrot.slane %v2242_v31, %v4090_v53  ;;  %v2282_v23 = vrot.slane %v1959_v35, %v4090_v53  ;;  %v2260_v43 = vcombine.low %v1952_v29, %v1960_v36  ;;  %v2298_v42 = vrot.slane %v2284_v38, %v4090_v53 }
 0x130   : > { %2522 = vst.msk [vmem:[#allocation2 + $0xe0] sm:$0xff] %vm2348_vm3, %v2518_v30  ;;  %2366 = vst.msk [vmem:[#allocation2 + $0x80] sm:$0xff] %vm2348_vm3, %v2234_v32  ;;  %v2267_v44 = vrot.slane %v2259_v0, %v4090_v53  ;;  %v2283_v26 = vcombine.low %v1961_v41, %v4167_v27 }
 0x131   : > { %v2258_v46 = vcombine.low %v2250_v39, %v2257_v40  ;;  %2370 = vst.msk [vmem:[#allocation2 + $0xa0] sm:$0x3] %vm2351_vm4, %v2282_v23  ;;  %v2274_v47 = vrot.slane %v2260_v43, %v4090_v53 }
 0x132   : > { %2541 = vst.msk [vmem:[#allocation2 + $0xa1] sm:$0x1] %vm2524_vm5, %v3775_v2  ;;  %v2291_v48 = vrot.slane %v2283_v26, %v4090_v53 }
 0x133   : > { %2368 = vst.msk [vmem:[#allocation2 + $0x90] sm:$0xff] %vm2348_vm3, %v2258_v46  ;;  %v2275_v3 = vcombine.low %v2267_v44, %v2274_v47  ;;  %2548 = sbr.rel (%p3514_p10) target bundleno = 315 (0x13b), region = 60 }
 0x134   : > { %2531 = vst.msk [vmem:[#allocation2 + $0x90] sm:$0x1] %vm2524_vm5, %v3775_v2  ;;  %v2299_v50 = vcombine.low %v2291_v48, %v2298_v42 }
 0x135   : > { %2369 = vst.msk [vmem:[#allocation2 + $0x98] sm:$0xff] %vm2348_vm3, %v2275_v3 }
 0x136   : > { %2371 = vst.msk [vmem:[#allocation2 + $0xa8] sm:$0xff] %vm2348_vm3, %v2299_v50 }
 0x137   : > { %2532 = vst.msk [vmem:[#allocation2 + $0xa8] sm:$0x1] %vm2524_vm5, %v3775_v2 }
 0x138   : > { %v3779_v27 = vmov 0.0  }
 0x139   : > { %2549 = vst.msk [vmem:[#allocation2] sm:$0xff] %vm2348_vm3, %v3779_v27  ;;  %2550 = vst.msk [vmem:[#allocation2 + $0x8] sm:$0xff] %vm2348_vm3, %v3779_v27 }
 0x13a   : > { %2551 = vst.msk [vmem:[#allocation2 + $0x10] sm:$0x3] %vm2351_vm4, %v3779_v27 }
 0x13b PF: > { %p3515_p11 = scmp.ne.s32.totalorder %s3757_s30, 1 }
 0x13d   : > { %2555 = sbr.rel (%p3515_p11) target bundleno = 325 (0x145), region = 64 }
 0x142   : > { %v3780_v53 = vmov 0.0  }
 0x143   : > { %2556 = vst.msk [vmem:[#allocation2 + $0xd8] sm:$0xff] %vm2348_vm3, %v3780_v53  ;;  %2557 = vst.msk [vmem:[#allocation2 + $0xe0] sm:$0xff] %vm2348_vm3, %v3780_v53 }
 0x144   : > { %2558 = vst.msk [vmem:[#allocation2 + $0xe8] sm:$0x3] %vm2351_vm4, %v3780_v53 }
 0x145 PF: > { %v3008_v2 = vld [vmem:[%s4678_s7] sm:$0xf]  ;;  %vm3040_vm6 = vcmask 1043456   ;;  %v2623_v54 = vsub.s32 0, %v3887_v7  ;;  %v2659_v56 = vsub.s32 1, %v3887_v7  ;;  %v2562_v57 = vld [vmem:[#allocation2 + $0x8] sm:$0xff] }
 0x146   : > { %v4300_v51 = vld [vmem:[%s4676_s5] sm:$0xff]  ;;  %3680 = vmatprep.subr.msk.bf16.mxu1 %vm3040_vm6, %v3008_v2  ;;  %v3042_v52 = vsel %vm3040_vm6, %v3008_v2, 0  ;;  %v2563_v17 = vld [vmem:[#allocation2 + $0x18] sm:$0xff]  ;;  %v2695_v59 = vsub.s32 2, %v3887_v7  ;;  %v2731_v60 = vsub.s32 3, %v3887_v7  ;;  %v2767_v61 = vsub.s32 4, %v3887_v7 }
 0x147   : > { %v2561_v8 = vld [vmem:[#allocation2] sm:$0xff]  ;;  %3659 = vmatpush3.bf16.msra.mxu1 %v3042_v52  ;;  %v4307_v62 = vld [vmem:[#allocation2 + $0x30] sm:$0xff]  ;;  %v4309_v63 = vld [vmem:[#allocation2 + $0x38] sm:$0xff]  ;;  %v4312_v1 = vrot.slane %v4300_v51, %v2623_v54  ;;  %v4315_v4 = vrot.slane %v4300_v51, %v2659_v56  ;;  %v2803_v6 = vsub.s32 5, %v3887_v7  ;;  %v2839_v9 = vsub.s32 6, %v3887_v7 }
 0x148   : > { %v2564_v58 = vld [vmem:[#allocation2 + $0x20] sm:$0xff]  ;;  %v2582_v45 = vld [vmem:[#allocation2 + $0x9] sm:$0xff]  ;;  %v4320_v12 = vrot.slane %v4300_v51, %v2695_v59  ;;  %v4323_v13 = vrot.slane %v4300_v51, %v2731_v60  ;;  %v4326_v14 = vrot.slane %v4300_v51, %v2767_v61  ;;  %v2875_v15 = vsub.s32 7, %v3887_v7  ;;  %v4329_v55 = vld [vmem:[#allocation2 + $0x31] sm:$0xff] }
 0x149   : > { %v2581_v37 = vld [vmem:[#allocation2 + $0x1] sm:$0xff]  ;;  %v2583_v10 = vld [vmem:[#allocation2 + $0x19] sm:$0xff]  ;;  %v2625_v16 = vmul.f32 %v4312_v1, %v2561_v8  ;;  %v2626_v18 = vmul.f32 %v4312_v1, %v2562_v57  ;;  %v2627_v19 = vmul.f32 %v4312_v1, %v2563_v17  ;;  %v2628_v20 = vmul.f32 %v4312_v1, %v2564_v58  ;;  %v2602_v21 = vld [vmem:[#allocation2 + $0xa] sm:$0xff] }
 0x14a   : > { %v2584_v11 = vld [vmem:[#allocation2 + $0x21] sm:$0xff]  ;;  %v4331_v49 = vld [vmem:[#allocation2 + $0x39] sm:$0xff]  ;;  %v2629_v24 = vmul.f32 %v4312_v1, %v4307_v62  ;;  %v2630_v25 = vmul.f32 %v4312_v1, %v4309_v63  ;;  %v2661_v28 = vmul.f32 %v4315_v4, %v2581_v37  ;;  %v2662_v29 = vmul.f32 %v4315_v4, %v2582_v45  ;;  %v4357_v2 = vld [vmem:[#allocation2 + $0x50] sm:$0xff] }
 0x14b   : > { %v2601_v5 = vld [vmem:[#allocation2 + $0x2] sm:$0xff]  ;;  %v2603_v22 = vld [vmem:[#allocation2 + $0x1a] sm:$0xff]  ;;  %v2605_v31 = vld [vmem:[#allocation2 + $0x32] sm:$0xff]  ;;  %v2663_v33 = vmul.f32 %v4315_v4, %v2583_v10  ;;  %v2664_v34 = vmul.f32 %v4315_v4, %v2584_v11  ;;  %v2665_v35 = vmul.f32 %v4315_v4, %v4329_v55  ;;  %v2666_v36 = vmul.f32 %v4315_v4, %v4331_v49 }
 0x14c   : > { %v2604_v30 = vld [vmem:[#allocation2 + $0x22] sm:$0xff]  ;;  %v2606_v32 = vld [vmem:[#allocation2 + $0x3a] sm:$0xff]  ;;  %v2677_v38 = vadd.f32 %v2661_v28, %v2625_v16  ;;  %v2678_v39 = vadd.f32 %v2662_v29, %v2626_v18  ;;  %v2697_v0 = vmul.f32 %v4320_v12, %v2601_v5  ;;  %v2698_v40 = vmul.f32 %v4320_v12, %v2602_v21 }
 0x14d   : > { %v2679_v41 = vadd.f32 %v2663_v33, %v2627_v19  ;;  %v2680_v23 = vadd.f32 %v2664_v34, %v2628_v20  ;;  %v2681_v43 = vadd.f32 %v2665_v35, %v2629_v24  ;;  %v2682_v44 = vadd.f32 %v2666_v36, %v2630_v25  ;;  %v2567_v53 = vld [vmem:[#allocation2 + $0x48] sm:$0xff] }
 0x14e   : > { %v2699_v46 = vmul.f32 %v4320_v12, %v2603_v22  ;;  %v2700_v47 = vmul.f32 %v4320_v12, %v2604_v30  ;;  %v2701_v26 = vmul.f32 %v4320_v12, %v2605_v31  ;;  %v2702_v42 = vmul.f32 %v4320_v12, %v2606_v32  ;;  %v4371_v5 = vld [vmem:[%s4676_s5 + $0x8] ss:$0 sm:$0xff] }
 0x14f   : > { %v2713_v3 = vadd.f32 %v2697_v0, %v2677_v38  ;;  %v2714_v48 = vadd.f32 %v2698_v40, %v2678_v39  ;;  %v2733_v50 = vmul.f32 %v4323_v13, %v2563_v17  ;;  %v2734_v27 = vmul.f32 %v4323_v13, %v2564_v58  ;;  %v2587_v0 = vld [vmem:[#allocation2 + $0x49] sm:$0xff] }
 0x150   : > { %v2715_v52 = vadd.f32 %v2699_v46, %v2679_v41  ;;  %v2716_v8 = vadd.f32 %v2700_v47, %v2680_v23  ;;  %v2717_v54 = vadd.f32 %v2701_v26, %v2681_v43  ;;  %v2718_v56 = vadd.f32 %v2702_v42, %v2682_v44  ;;  %v2607_v40 = vld [vmem:[#allocation2 + $0x4a] sm:$0xff]  ;;  %v2608_v23 = vld [vmem:[#allocation2 + $0x52] sm:$0xff] }
 0x151   : > { %v2735_v57 = vmul.f32 %v4323_v13, %v4307_v62  ;;  %v2736_v59 = vmul.f32 %v4323_v13, %v4309_v63  ;;  %v2737_v60 = vmul.f32 %v4323_v13, %v2567_v53  ;;  %v2738_v17 = vmul.f32 %v4323_v13, %v4357_v2 }
 0x152   : > { %v2749_v61 = vadd.f32 %v2733_v50, %v2713_v3  ;;  %v2750_v58 = vadd.f32 %v2734_v27, %v2714_v48  ;;  %v2769_v37 = vmul.f32 %v4326_v14, %v2583_v10  ;;  %v2770_v45 = vmul.f32 %v4326_v14, %v2584_v11 }
 0x153   : > { %v2751_v16 = vadd.f32 %v2735_v57, %v2715_v52  ;;  %v2752_v18 = vadd.f32 %v2736_v59, %v2716_v8  ;;  %v4373_v19 = vadd.f32 %v2737_v60, %v2717_v54  ;;  %v4375_v20 = vadd.f32 %v2738_v17, %v2718_v56  ;;  %v4422_v56 = vld [vmem:[%s4677_s6] ss:$0 sm:$0xff] }
 0x154   : > { %v2771_v21 = vmul.f32 %v4326_v14, %v4329_v55  ;;  %v2772_v24 = vmul.f32 %v4326_v14, %v4331_v49  ;;  %v2785_v10 = vadd.f32 %v2769_v37, %v2749_v61  ;;  %v2786_v25 = vadd.f32 %v2770_v45, %v2750_v58  ;;  %v2569_v61 = vld [vmem:[#allocation2 + $0x60] sm:$0xff] }
 0x155   : > { %v4384_v11 = vrot.slane %v4300_v51, %v2803_v6  ;;  %v4389_v28 = vrot.slane %v4300_v51, %v2839_v9  ;;  %v4392_v29 = vrot.slane %v4300_v51, %v2875_v15  ;;  %v2913_v35 = vmul.f32 %v4371_v5, %v2605_v31  ;;  %v2588_v9 = vld [vmem:[#allocation2 + $0x51] sm:$0xff] }
 0x156   : > { %v2787_v33 = vadd.f32 %v2771_v21, %v2751_v16  ;;  %v2788_v34 = vadd.f32 %v2772_v24, %v2752_v18  ;;  %v2914_v36 = vmul.f32 %v4371_v5, %v2606_v32  ;;  %v2632_v44 = vmul.f32 %v4312_v1, %v4357_v2  ;;  %v2589_v16 = vld [vmem:[#allocation2 + $0x61] sm:$0xff]  ;;  %v2590_v18 = vld [vmem:[#allocation2 + $0x69] sm:$0xff] }
 0x157   : > { %v2805_v38 = vmul.f32 %v4384_v11, %v2603_v22  ;;  %v2806_v39 = vmul.f32 %v4384_v11, %v2604_v30  ;;  %v2807_v6 = vmul.f32 %v4384_v11, %v2605_v31  ;;  %v2808_v7 = vmul.f32 %v4384_v11, %v2606_v32  ;;  %v2609_v21 = vld [vmem:[#allocation2 + $0x62] sm:$0xff] }
 0x158   : > { %v2841_v51 = vmul.f32 %v4389_v28, %v4307_v62  ;;  %v2842_v15 = vmul.f32 %v4389_v28, %v4309_v63  ;;  %v2877_v41 = vmul.f32 %v4392_v29, %v4329_v55  ;;  %v2631_v22 = vmul.f32 %v4312_v1, %v2567_v53 }
 0x159   : > { %v2821_v30 = vadd.f32 %v2805_v38, %v2785_v10  ;;  %v2822_v43 = vadd.f32 %v2806_v39, %v2786_v25  ;;  %v2823_v31 = vadd.f32 %v2807_v6, %v2787_v33  ;;  %v2878_v32 = vmul.f32 %v4392_v29, %v4331_v49  ;;  %v2570_v33 = vld [vmem:[#allocation2 + $0x68] sm:$0xff] }
 0x15a   : > { %v2667_v62 = vmul.f32 %v4315_v4, %v2587_v0  ;;  %v2668_v46 = vmul.f32 %v4315_v4, %v2588_v9  ;;  %v2703_v63 = vmul.f32 %v4320_v12, %v2607_v40  ;;  %v2824_v47 = vadd.f32 %v2808_v7, %v2788_v34  ;;  %v2610_v34 = vld [vmem:[#allocation2 + $0x6a] sm:$0xff] }
 0x15b   : > { %v2857_v55 = vadd.f32 %v2841_v51, %v2821_v30  ;;  %v2858_v26 = vadd.f32 %v2842_v15, %v2822_v43  ;;  %v2704_v42 = vmul.f32 %v4320_v12, %v2608_v23  ;;  %v2773_v50 = vmul.f32 %v4326_v14, %v2587_v0 }
 0x15c   : > { %v2683_v3 = vadd.f32 %v2667_v62, %v2631_v22  ;;  %v2684_v48 = vadd.f32 %v2668_v46, %v2632_v44  ;;  %v2774_v49 = vmul.f32 %v4326_v14, %v2588_v9  ;;  %v2809_v8 = vmul.f32 %v4384_v11, %v2607_v40 }
 0x15d   : > { %v2893_v27 = vadd.f32 %v2877_v41, %v2857_v55  ;;  %v2894_v52 = vadd.f32 %v2878_v32, %v2858_v26  ;;  %v2843_v54 = vmul.f32 %v4389_v28, %v2567_v53  ;;  %v2810_v59 = vmul.f32 %v4384_v11, %v2608_v23 }
 0x15e   : > { %v4424_v57 = vadd.f32 %v2703_v63, %v2683_v3  ;;  %v2844_v60 = vmul.f32 %v4389_v28, %v4357_v2  ;;  %v2879_v17 = vmul.f32 %v4392_v29, %v2587_v0  ;;  %v2880_v53 = vmul.f32 %v4392_v29, %v2588_v9 }
 0x15f   : > { %v2929_v58 = vadd.f32 %v2913_v35, %v2893_v27  ;;  %v2930_v37 = vadd.f32 %v2914_v36, %v2894_v52  ;;  %v2859_v45 = vadd.f32 %v2843_v54, %v2823_v31  ;;  %v2915_v10 = vmul.f32 %v4371_v5, %v2607_v40 }
 0x160   : > { %v2860_v24 = vadd.f32 %v2844_v60, %v2824_v47  ;;  %v2916_v25 = vmul.f32 %v4371_v5, %v2608_v23  ;;  %v2633_v2 = vmul.f32 %v4312_v1, %v2569_v61  ;;  %v2634_v39 = vmul.f32 %v4312_v1, %v2570_v33 }
 0x161   : > { %v2952_v38 = vadd.f32 %v4422_v56, %v2929_v58  ;;  %v2953_v35 = vadd.f32 %v4422_v56, %v2930_v37  ;;  %v2895_v36 = vadd.f32 %v2879_v17, %v2859_v45  ;;  %v2669_v7 = vmul.f32 %v4315_v4, %v2589_v16  ;;  %v2571_v17 = vld [vmem:[#allocation2 + $0x78] sm:$0xff] }
 0x162   : > { %v2896_v6 = vadd.f32 %v2880_v53, %v2860_v24  ;;  %v2670_v0 = vmul.f32 %v4315_v4, %v2590_v18  ;;  %v2705_v9 = vmul.f32 %v4320_v12, %v2609_v21  ;;  %v2706_v41 = vmul.f32 %v4320_v12, %v2610_v34  ;;  %v2572_v24 = vld [vmem:[#allocation2 + $0x80] sm:$0xff] }
 0x163   : > { %v2968_v40 = vmax.f32 %v2952_v38, 0.0  ;;  %v2969_v51 = vmax.f32 %v2953_v35, 0.0  ;;  %v2931_v15 = vadd.f32 %v2915_v10, %v2895_v36  ;;  %v2720_v23 = vadd.f32 %v2704_v42, %v2684_v48  ;;  %v2591_v10 = vld [vmem:[#allocation2 + $0x79] sm:$0xff] }
 0x164   : > { %v2932_v22 = vadd.f32 %v2916_v25, %v2896_v6  ;;  %v2685_v30 = vadd.f32 %v2669_v7, %v2633_v2  ;;  %v2686_v43 = vadd.f32 %v2670_v0, %v2634_v39  ;;  %v2739_v62 = vmul.f32 %v4323_v13, %v2569_v61 }
 0x165   : > { %v2984_v31 = vmin.f32 %v2968_v40, 6.0  ;;  %v2985_v32 = vmin.f32 %v2969_v51, 6.0  ;;  %v2954_v44 = vadd.f32 %v4422_v56, %v2931_v15  ;;  %v2740_v55 = vmul.f32 %v4323_v13, %v2570_v33 }
 0x166   : > { %v2955_v46 = vadd.f32 %v4422_v56, %v2932_v22  ;;  %v4444_v63 = vadd.f32 %v2705_v9, %v2685_v30  ;;  %v4446_v47 = vadd.f32 %v2706_v41, %v2686_v43  ;;  %v2775_v42 = vmul.f32 %v4326_v14, %v2589_v16 }
 0x167   : > { %v3000_v26 = vpack.c.bf16 %v2985_v32, %v2984_v31  ;;  %v2970_v3 = vmax.f32 %v2954_v44, 0.0  ;;  %v2789_v48 = vadd.f32 %v2773_v50, %v4373_v19  ;;  %v2776_v52 = vmul.f32 %v4326_v14, %v2590_v18 }
 0x168   : > { %v2971_v27 = vmax.f32 %v2955_v46, 0.0  ;;  %v2790_v54 = vadd.f32 %v2774_v49, %v4375_v20  ;;  %v2811_v60 = vmul.f32 %v4384_v11, %v2609_v21  ;;  %v2845_v45 = vmul.f32 %v4389_v28, %v2569_v61  ;;  %v2592_v20 = vld [vmem:[#allocation2 + $0x81] sm:$0xff] }
 0x169   : > { %3660 = vmatprep.mubr.msk.bf16.mxu1 %vm2348_vm3, %v3000_v26  ;;  %v2986_v58 = vmin.f32 %v2970_v3, 6.0  ;;  %v2825_v37 = vadd.f32 %v2809_v8, %v2789_v48  ;;  %v2846_v53 = vmul.f32 %v4389_v28, %v2570_v33  ;;  %v2881_v50 = vmul.f32 %v4392_v29, %v2589_v16  ;;  %v2611_v49 = vld [vmem:[#allocation2 + $0x7a] sm:$0xff]  ;;  %v2612_v8 = vld [vmem:[#allocation2 + $0x82] sm:$0xff] }
 0x16a   : > { %v2987_v25 = vmin.f32 %v2971_v27, 6.0  ;;  %v2826_v19 = vadd.f32 %v2810_v59, %v2790_v54  ;;  %v2882_v2 = vmul.f32 %v4392_v29, %v2590_v18  ;;  %v2917_v35 = vmul.f32 %v4371_v5, %v2609_v21 }
 0x16b   : > { %v2861_v38 = vadd.f32 %v2845_v45, %v2825_v37  ;;  %v2918_v36 = vmul.f32 %v4371_v5, %v2610_v34  ;;  %v2635_v61 = vmul.f32 %v4312_v1, %v2571_v17  ;;  %v2636_v6 = vmul.f32 %v4312_v1, %v2572_v24  ;;  %v2593_v37 = vld [vmem:[#allocation2 + $0x91] sm:$0xff] }
 0x16c   : > { %v3001_v39 = vpack.c.bf16 %v2987_v25, %v2986_v58  ;;  %v2862_v33 = vadd.f32 %v2846_v53, %v2826_v19  ;;  %v2671_v59 = vmul.f32 %v4315_v4, %v2591_v10  ;;  %v2812_v16 = vmul.f32 %v4384_v11, %v2610_v34  ;;  %v2594_v25 = vld [vmem:[#allocation2 + $0x99] sm:$0xff] }
 0x16d   : > { %v2897_v7 = vadd.f32 %v2881_v50, %v2861_v38  ;;  %v2672_v18 = vmul.f32 %v4315_v4, %v2592_v20  ;;  %v2707_v0 = vmul.f32 %v4320_v12, %v2611_v49  ;;  %v2708_v40 = vmul.f32 %v4320_v12, %v2612_v8  ;;  %v2613_v19 = vld [vmem:[#allocation2 + $0x92] sm:$0xff] }
 0x16e   : > { %3661 = vmatmul.mubr.msk.bf16.vlgmr.msra.gmra.mxu1 %vm2348_vm3, %v3001_v39  ;;  %v2898_v21 = vadd.f32 %v2882_v2, %v2862_v33  ;;  %v2687_v9 = vadd.f32 %v2671_v59, %v2635_v61  ;;  %v2741_v51 = vmul.f32 %v4323_v13, %v2571_v17  ;;  %v2755_v22 = vadd.f32 %v2739_v62, %v4424_v57 }
 0x16f   : > { %v2933_v15 = vadd.f32 %v2917_v35, %v2897_v7  ;;  %v2688_v41 = vadd.f32 %v2672_v18, %v2636_v6  ;;  %v2756_v30 = vadd.f32 %v2740_v55, %v2720_v23  ;;  %v2742_v31 = vmul.f32 %v4323_v13, %v2572_v24  ;;  %v2573_v35 = vld [vmem:[#allocation2 + $0x90] sm:$0xff] }
 0x170   : > { %v2934_v43 = vadd.f32 %v2918_v36, %v2898_v21  ;;  %v4471_v34 = vadd.f32 %v2707_v0, %v2687_v9  ;;  %v2777_v32 = vmul.f32 %v4326_v14, %v2591_v10  ;;  %v2778_v46 = vmul.f32 %v4326_v14, %v2592_v20  ;;  %v2614_v36 = vld [vmem:[#allocation2 + $0x9a] sm:$0xff] }
 0x171   : > { %v2956_v44 = vadd.f32 %v4422_v56, %v2933_v15  ;;  %v2791_v26 = vadd.f32 %v2775_v42, %v2755_v22  ;;  %v2792_v3 = vadd.f32 %v2776_v52, %v2756_v30  ;;  %v4478_v27 = vadd.f32 %v2708_v40, %v2688_v41 }
 0x172   : > { %v2957_v48 = vadd.f32 %v4422_v56, %v2934_v43  ;;  %v2813_v57 = vmul.f32 %v4384_v11, %v2611_v49  ;;  %v2847_v23 = vmul.f32 %v4389_v28, %v2571_v17  ;;  %v2848_v58 = vmul.f32 %v4389_v28, %v2572_v24 }
 0x173   : > { %v2972_v62 = vmax.f32 %v2956_v44, 0.0  ;;  %v2827_v55 = vadd.f32 %v2811_v60, %v2791_v26  ;;  %v2828_v54 = vadd.f32 %v2812_v16, %v2792_v3  ;;  %v2883_v53 = vmul.f32 %v4392_v29, %v2591_v10  ;;  %v2574_v60 = vld [vmem:[#allocation2 + $0x98] sm:$0xff] }
 0x174   : > { %v2973_v45 = vmax.f32 %v2957_v48, 0.0  ;;  %v2884_v42 = vmul.f32 %v4392_v29, %v2592_v20  ;;  %v2919_v52 = vmul.f32 %v4371_v5, %v2611_v49  ;;  %v2920_v17 = vmul.f32 %v4371_v5, %v2612_v8 }
 0x175   : > { %v2988_v50 = vmin.f32 %v2972_v62, 6.0  ;;  %v2863_v2 = vadd.f32 %v2847_v23, %v2827_v55  ;;  %v2864_v38 = vadd.f32 %v2848_v58, %v2828_v54  ;;  %v2637_v24 = vmul.f32 %v4312_v1, %v2573_v35 }
 0x176   : > { %v2989_v61 = vmin.f32 %v2973_v45, 6.0  ;;  %v2638_v39 = vmul.f32 %v4312_v1, %v2574_v60  ;;  %v2673_v10 = vmul.f32 %v4315_v4, %v2593_v37  ;;  %v2674_v49 = vmul.f32 %v4315_v4, %v2594_v25 }
 0x177   : > { %v2899_v20 = vadd.f32 %v2883_v53, %v2863_v2  ;;  %v2900_v33 = vadd.f32 %v2884_v42, %v2864_v38  ;;  %v2709_v6 = vmul.f32 %v4320_v12, %v2613_v19  ;;  %v2814_v16 = vmul.f32 %v4384_v11, %v2612_v8 }
 0x178   : > { %v3002_v59 = vpack.c.bf16 %v2989_v61, %v2988_v50  ;;  %v2689_v7 = vadd.f32 %v2673_v10, %v2637_v24  ;;  %v2710_v18 = vmul.f32 %v4320_v12, %v2614_v36  ;;  %v2690_v9 = vadd.f32 %v2674_v49, %v2638_v39  ;;  %v2596_v50 = vld [vmem:[#allocation2 + $0xb1] sm:$0xff] }
 0x179   : > { %v2935_v0 = vadd.f32 %v2919_v52, %v2899_v20  ;;  %v2936_v21 = vadd.f32 %v2920_v17, %v2900_v33  ;;  %v2743_v40 = vmul.f32 %v4323_v13, %v2573_v35  ;;  %v2744_v41 = vmul.f32 %v4323_v13, %v2574_v60  ;;  %v2595_v52 = vld [vmem:[#allocation2 + $0xa9] sm:$0xff] }
 0x17a   : > { %3664 = vmatprep.mubr.msk.bf16.mxu1 %vm2348_vm3, %v3002_v59  ;;  %v4496_v15 = vadd.f32 %v2709_v6, %v2689_v7  ;;  %v2757_v22 = vadd.f32 %v2741_v51, %v4444_v63  ;;  %v2758_v30 = vadd.f32 %v2742_v31, %v4446_v47  ;;  %v4503_v44 = vadd.f32 %v2710_v18, %v2690_v9  ;;  %v2575_v51 = vld [vmem:[#allocation2 + $0xa8] sm:$0xff]  ;;  %v2576_v31 = vld [vmem:[#allocation2 + $0xb0] sm:$0xff] }
 0x17b   : > { %v2958_v8 = vadd.f32 %v4422_v56, %v2935_v0  ;;  %v2959_v43 = vadd.f32 %v4422_v56, %v2936_v21  ;;  %v2779_v26 = vmul.f32 %v4326_v14, %v2593_v37  ;;  %v2780_v3 = vmul.f32 %v4326_v14, %v2594_v25 }
 0x17c   : > { %v2793_v48 = vadd.f32 %v2777_v32, %v2757_v22  ;;  %v2794_v23 = vadd.f32 %v2778_v46, %v2758_v30  ;;  %v2815_v62 = vmul.f32 %v4384_v11, %v2613_v19  ;;  %v2849_v63 = vmul.f32 %v4389_v28, %v2573_v35  ;;  %v2615_v32 = vld [vmem:[#allocation2 + $0xaa] sm:$0xff]  ;;  %v2616_v35 = vld [vmem:[#allocation2 + $0xb2] sm:$0xff] }
 0x17d   : > { %v2974_v55 = vmax.f32 %v2958_v8, 0.0  ;;  %v2975_v54 = vmax.f32 %v2959_v43, 0.0  ;;  %v2850_v47 = vmul.f32 %v4389_v28, %v2574_v60  ;;  %v2885_v53 = vmul.f32 %v4392_v29, %v2593_v37 }
 0x17e   : > { %v2829_v58 = vadd.f32 %v2813_v57, %v2793_v48  ;;  %v2830_v45 = vadd.f32 %v2814_v16, %v2794_v23  ;;  %v2886_v42 = vmul.f32 %v4392_v29, %v2594_v25  ;;  %v2921_v38 = vmul.f32 %v4371_v5, %v2613_v19 }
 0x17f   : > { %v2990_v46 = vmin.f32 %v2974_v55, 6.0  ;;  %v2991_v2 = vmin.f32 %v2975_v54, 6.0  ;;  %v2922_v17 = vmul.f32 %v4371_v5, %v2614_v36  ;;  %v2639_v24 = vmul.f32 %v4312_v1, %v2575_v51 }
 0x180   : > { %v2865_v61 = vadd.f32 %v2849_v63, %v2829_v58  ;;  %v2866_v60 = vadd.f32 %v2850_v47, %v2830_v45  ;;  %v2640_v57 = vmul.f32 %v4312_v1, %v2576_v31  ;;  %v2675_v37 = vmul.f32 %v4315_v4, %v2595_v52  ;;  %v2578_v45 = vld [vmem:[#allocation2 + $0xc8] sm:$0xff] }
 0x181   : > { %v3003_v39 = vpack.c.bf16 %v2991_v2, %v2990_v46  ;;  %v2676_v25 = vmul.f32 %v4315_v4, %v2596_v50  ;;  %v2711_v10 = vmul.f32 %v4320_v12, %v2615_v32  ;;  %v2816_v20 = vmul.f32 %v4384_v11, %v2614_v36  ;;  %v2598_v46 = vld [vmem:[#allocation2 + $0xc9] sm:$0xff] }
 0x182   : > { %v2901_v33 = vadd.f32 %v2885_v53, %v2865_v61  ;;  %v2902_v19 = vadd.f32 %v2886_v42, %v2866_v60  ;;  %v2712_v49 = vmul.f32 %v4320_v12, %v2616_v35  ;;  %v2691_v6 = vadd.f32 %v2675_v37, %v2639_v24  ;;  %v2597_v53 = vld [vmem:[#allocation2 + $0xc1] sm:$0xff] }
 0x183   : > { %3665 = vmatmul.mubr.msk.bf16.gmra.mxu1 %vm2348_vm3, %v3003_v39  ;;  %v2692_v59 = vadd.f32 %v2676_v25, %v2640_v57  ;;  %v2745_v16 = vmul.f32 %v4323_v13, %v2575_v51  ;;  %v2759_v1 = vadd.f32 %v2743_v40, %v4471_v34  ;;  %v2746_v4 = vmul.f32 %v4323_v13, %v2576_v31 }
 0x184   : > { %v2937_v7 = vadd.f32 %v2921_v38, %v2901_v33  ;;  %v2938_v18 = vadd.f32 %v2922_v17, %v2902_v19  ;;  %v2760_v0 = vadd.f32 %v2744_v41, %v4478_v27  ;;  %v2727_v21 = vadd.f32 %v2711_v10, %v2691_v6  ;;  %v2617_v38 = vld [vmem:[#allocation2 + $0xc2] sm:$0xff]  ;;  %v2618_v33 = vld [vmem:[#allocation2 + $0xca] sm:$0xff]  ;;  %v2579_v6 = vld [vmem:[#allocation2 + $0xd8] sm:$0xff] }
 0x185   : > { %v4526_v36 = vadd.f32 %v2712_v49, %v2692_v59  ;;  %v2781_v9 = vmul.f32 %v4326_v14, %v2595_v52  ;;  %v2795_v12 = vadd.f32 %v2779_v26, %v2759_v1  ;;  %v2782_v8 = vmul.f32 %v4326_v14, %v2596_v50  ;;  %v2577_v26 = vld [vmem:[#allocation2 + $0xc0] sm:$0xff] }
 0x186   : > { %v2960_v22 = vadd.f32 %v4422_v56, %v2937_v7  ;;  %v2961_v30 = vadd.f32 %v4422_v56, %v2938_v18  ;;  %v2796_v43 = vadd.f32 %v2780_v3, %v2760_v0  ;;  %v2817_v34 = vmul.f32 %v4384_v11, %v2615_v32  ;;  %v2580_v0 = vld [vmem:[#allocation2 + $0xe0] sm:$0xff] }
 0x187   : > { %v2831_v40 = vadd.f32 %v2815_v62, %v2795_v12  ;;  %v2851_v48 = vmul.f32 %v4389_v28, %v2575_v51  ;;  %v2852_v27 = vmul.f32 %v4389_v28, %v2576_v31  ;;  %v2887_v54 = vmul.f32 %v4392_v29, %v2595_v52 }
 0x188   : > { %v2976_v41 = vmax.f32 %v2960_v22, 0.0  ;;  %v2977_v23 = vmax.f32 %v2961_v30, 0.0  ;;  %v2832_v55 = vadd.f32 %v2816_v20, %v2796_v43  ;;  %v2818_v63 = vmul.f32 %v4384_v11, %v2616_v35  ;;  %v2599_v30 = vld [vmem:[#allocation2 + $0xd9] sm:$0xff] }
 0x189   : > { %v2867_v47 = vadd.f32 %v2851_v48, %v2831_v40  ;;  %v2888_v58 = vmul.f32 %v4392_v29, %v2596_v50  ;;  %v2923_v3 = vmul.f32 %v4371_v5, %v2615_v32  ;;  %v2924_v31 = vmul.f32 %v4371_v5, %v2616_v35 }
 0x18a   : > { %v2992_v62 = vmin.f32 %v2976_v41, 6.0  ;;  %v2993_v42 = vmin.f32 %v2977_v23, 6.0  ;;  %v2868_v51 = vadd.f32 %v2852_v27, %v2832_v55  ;;  %v2747_v52 = vmul.f32 %v4323_v13, %v2577_v26  ;;  %v2600_v27 = vld [vmem:[#allocation2 + $0xe1] sm:$0xff] }
 0x18b   : > { %v2903_v2 = vadd.f32 %v2887_v54, %v2867_v47  ;;  %v2761_v17 = vadd.f32 %v2745_v16, %v4496_v15  ;;  %v2762_v61 = vadd.f32 %v2746_v4, %v4503_v44  ;;  %v2748_v32 = vmul.f32 %v4323_v13, %v2578_v45  ;;  %v2619_v55 = vld [vmem:[#allocation2 + $0xda] sm:$0xff]  ;;  %v2620_v47 = vld [vmem:[#allocation2 + $0xe2] sm:$0xff] }
 0x18c   : > { %v3004_v60 = vpack.c.bf16 %v2993_v42, %v2992_v62  ;;  %v2904_v50 = vadd.f32 %v2888_v58, %v2868_v51  ;;  %v2783_v24 = vmul.f32 %v4326_v14, %v2597_v53  ;;  %v2784_v39 = vmul.f32 %v4326_v14, %v2598_v46 }
 0x18d   : > { %v2939_v57 = vadd.f32 %v2923_v3, %v2903_v2  ;;  %v2797_v37 = vadd.f32 %v2781_v9, %v2761_v17  ;;  %v2798_v35 = vadd.f32 %v2782_v8, %v2762_v61  ;;  %v2819_v10 = vmul.f32 %v4384_v11, %v2617_v38 }
 0x18e   : > { %3668 = vmatprep.mubr.msk.bf16.mxu1 %vm2348_vm3, %v3004_v60  ;;  %v2940_v25 = vadd.f32 %v2924_v31, %v2904_v50  ;;  %v2853_v15 = vmul.f32 %v4389_v28, %v2577_v26  ;;  %v2854_v44 = vmul.f32 %v4389_v28, %v2578_v45  ;;  %v2889_v49 = vmul.f32 %v4392_v29, %v2597_v53 }
 0x18f   : > { %v2962_v20 = vadd.f32 %v4422_v56, %v2939_v57  ;;  %v2833_v13 = vadd.f32 %v2817_v34, %v2797_v37  ;;  %v2834_v19 = vadd.f32 %v2818_v63, %v2798_v35  ;;  %v2890_v59 = vmul.f32 %v4392_v29, %v2598_v46 }
 0x190   : > { %v2963_v14 = vadd.f32 %v4422_v56, %v2940_v25  ;;  %v2925_v16 = vmul.f32 %v4371_v5, %v2617_v38  ;;  %v2926_v1 = vmul.f32 %v4371_v5, %v2618_v33  ;;  %v2763_v9 = vadd.f32 %v2747_v52, %v2727_v21  ;;  %v3580_v25 = vld [vmem:[%s3903_s16 + $0x18] sm:$0xff]  }
 0x191   : > { %v2978_v7 = vmax.f32 %v2962_v20, 0.0  ;;  %v2869_v18 = vadd.f32 %v2853_v15, %v2833_v13  ;;  %v2870_v4 = vadd.f32 %v2854_v44, %v2834_v19  ;;  %v2820_v22 = vmul.f32 %v4384_v11, %v2618_v33  ;;  %v3532_v20 = vld [vmem:[%s3903_s16 + $0x20] sm:$0x1]  ;;  %v3529_v19 = vld [vmem:[%s3903_s16 + $0x14] sm:$0x1] }
 0x192   : > { %v2979_v12 = vmax.f32 %v2963_v14, 0.0  ;;  %v2764_v8 = vadd.f32 %v2748_v32, %v4526_v36  ;;  %v2855_v43 = vmul.f32 %v4389_v28, %v2579_v6  ;;  %v2799_v41 = vadd.f32 %v2783_v24, %v2763_v9  ;;  %v4578_v14 = vld [vmem:[%s4679_s8] ss:$0 sm:$0xff] }
 0x193   : > { %v2994_v34 = vmin.f32 %v2978_v7, 6.0  ;;  %v2905_v40 = vadd.f32 %v2889_v49, %v2869_v18  ;;  %v2906_v48 = vadd.f32 %v2890_v59, %v2870_v4  ;;  %v2856_v26 = vmul.f32 %v4389_v28, %v2580_v0 }
 0x194   : > { %v2995_v23 = vmin.f32 %v2979_v12, 6.0  ;;  %v2800_v54 = vadd.f32 %v2784_v39, %v2764_v8  ;;  %v2835_v58 = vadd.f32 %v2819_v10, %v2799_v41  ;;  %v2891_v11 = vmul.f32 %v4392_v29, %v2599_v30  ;;  %v3527_v10 = vld [vmem:[%s3903_s16 + $0xc] sm:$0xff]  }
 0x195   : > { %v2941_v63 = vadd.f32 %v2925_v16, %v2905_v40  ;;  %v2942_v21 = vadd.f32 %v2926_v1, %v2906_v48  ;;  %v2892_v45 = vmul.f32 %v4392_v29, %v2600_v27  ;;  %v2927_v51 = vmul.f32 %v4371_v5, %v2619_v55 }
 0x196   : > { %v3005_v3 = vpack.c.bf16 %v2995_v23, %v2994_v34  ;;  %v2836_v36 = vadd.f32 %v2820_v22, %v2800_v54  ;;  %v2871_v42 = vadd.f32 %v2855_v43, %v2835_v58  ;;  %v2928_v31 = vmul.f32 %v4371_v5, %v2620_v47  ;;  %v3538_v58 = vld [vmem:[%s3903_s16 + $0x38] sm:$0x1] }
 0x197   : > { %v2964_v53 = vadd.f32 %v4422_v56, %v2941_v63  ;;  %v2965_v62 = vadd.f32 %v4422_v56, %v2942_v21  ;;  %v3566_v15 = vunpack.c.l.bf16 %v3580_v25  ;;  %v3567_v44 = vunpack.c.h.bf16 %v3580_v25  ;;  %v3533_v63 = vld [vmem:[%s3903_s16 + $0x24] sm:$0xff]  }
 0x198   : > { %3669 = vmatmul.mubr.msk.bf16.gmra.mxu1 %vm2348_vm3, %v3005_v3  ;;  %v2872_v28 = vadd.f32 %v2856_v26, %v2836_v36  ;;  %v2907_v38 = vadd.f32 %v2891_v11, %v2871_v42  ;;  %v3163_v33 = vunpack.c.l.bf16 %v3527_v10  ;;  %v3164_v13 = vunpack.c.h.bf16 %v3527_v10  ;;  %v3581_v26 = vld [vmem:[%s3903_s16 + $0x30] sm:$0xff]   ;;  %v3535_v36 = vld [vmem:[%s3903_s16 + $0x2c] sm:$0x1] }
 0x199   : > { %v2980_v46 = vmax.f32 %v2964_v53, 0.0  ;;  %v2981_v2 = vmax.f32 %v2965_v62, 0.0  ;;  %v3211_v49 = vrot.slane %v3566_v15, 1  ;;  %v3212_v6 = vrot.slane %v3567_v44, 1  ;;  %v3582_v10 = vld [vmem:[%s3903_s16 + $0x48] sm:$0xff]   ;;  %v3539_v15 = vld [vmem:[%s3903_s16 + $0x3c] sm:$0xff]  }
 0x19a   : > { %v2908_v52 = vadd.f32 %v2892_v45, %v2872_v28  ;;  %v2943_v61 = vadd.f32 %v2927_v51, %v2907_v38  ;;  %vm3205_vm7 = vcmask 1046528   ;;  %v3206_v59 = vrot.slane %v3163_v33, 1  ;;  %v3544_v33 = vld [vmem:[%s3903_s16 + $0x50] sm:$0x1] }
 0x19b   : > { %v2996_v17 = vmin.f32 %v2980_v46, 6.0  ;;  %v2997_v29 = vmin.f32 %v2981_v2, 6.0  ;;  %v3207_v16 = vrot.slane %v3164_v13, 1  ;;  %v3165_v1 = vunpack.c.l.bf16 %v3529_v19 }
 0x19c   : > { %v2944_v60 = vadd.f32 %v2928_v31, %v2908_v52  ;;  %v2966_v32 = vadd.f32 %v4422_v56, %v2943_v61  ;;  %v3213_v18 = vsel %vm3205_vm7, %v3211_v49, %v3212_v6  ;;  %v3570_v21 = vunpack.c.l.bf16 %v3581_v26  ;;  %v3541_v49 = vld [vmem:[%s3903_s16 + $0x44] sm:$0x1] }
 0x19d   : > { %v3006_v50 = vpack.c.bf16 %v2997_v29, %v2996_v17  ;;  %v3208_v12 = vsel %vm3205_vm7, %v3206_v59, %v3207_v16  ;;  %v3209_v22 = vrot.slane %v3165_v1, 1  ;;  %v3571_v47 = vunpack.c.h.bf16 %v3581_v26 }
 0x19e   : > { %v2967_v24 = vadd.f32 %v4422_v56, %v2944_v60  ;;  %v2982_v5 = vmax.f32 %v2966_v32, 0.0  ;;  %v3168_v56 = vunpack.c.l.bf16 %v3532_v20  ;;  %v3169_v11 = vunpack.c.l.bf16 %v3533_v63 }
 0x19f   : > { %3672 = vmatprep.mubr.msk.bf16.mxu1 %vm2348_vm3, %v3006_v50  ;;  %v3210_v41 = vsel %vm3205_vm7, %v3207_v16, %v3209_v22  ;;  %v3170_v3 = vunpack.c.h.bf16 %v3533_v63  ;;  %v3221_v45 = vrot.slane %v3570_v21, 1  ;;  %v3222_v53 = vrot.slane %v3571_v47, 1 }
 0x1a0   : > { %v2983_v57 = vmax.f32 %v2967_v24, 0.0  ;;  %v2998_v39 = vmin.f32 %v2982_v5, 6.0  ;;  %v3214_v4 = vrot.slane %v3168_v56, 1  ;;  %v3174_v62 = vunpack.c.l.bf16 %v3538_v58  ;;  %v3285_v58 = vld [vmem:[%s3939_s28 + $0x8] sm:$0x1] }
 0x1a1   : > { %v3216_v42 = vrot.slane %v3169_v11, 1  ;;  %v3217_v51 = vrot.slane %v3170_v3, 1  ;;  %v3171_v28 = vunpack.c.l.bf16 %v3535_v36  ;;  %v3223_v46 = vsel %vm3205_vm7, %v3221_v45, %v3222_v53  ;;  %v3547_v45 = vld [vmem:[%s3903_s16 + $0x5c] sm:$0x1] }
 0x1a2   : > { %v2999_v37 = vmin.f32 %v2983_v57, 6.0  ;;  %v3215_v34 = vsel %vm3205_vm7, %v3212_v6, %v3214_v4  ;;  %v3224_v2 = vrot.slane %v3174_v62, 1  ;;  %v3574_v44 = vunpack.c.l.bf16 %v3582_v10 }
 0x1a3   : > { %v3218_v17 = vsel %vm3205_vm7, %v3216_v42, %v3217_v51  ;;  %v3219_v29 = vrot.slane %v3171_v28, 1  ;;  %v3575_v20 = vunpack.c.h.bf16 %v3582_v10  ;;  %v3175_v13 = vunpack.c.l.bf16 %v3539_v15 }
 0x1a4   : > { %v3007_v35 = vpack.c.bf16 %v2999_v37, %v2998_v39  ;;  %v3225_v32 = vsel %vm3205_vm7, %v3222_v53, %v3224_v2  ;;  %v3176_v19 = vunpack.c.h.bf16 %v3539_v15  ;;  %v3231_v6 = vrot.slane %v3574_v44, 1 }
 0x1a5   : > { %v3220_v39 = vsel %vm3205_vm7, %v3217_v51, %v3219_v29  ;;  %v3232_v56 = vrot.slane %v3575_v20, 1  ;;  %v3180_v59 = vunpack.c.l.bf16 %v3544_v33  ;;  %v3226_v16 = vrot.slane %v3175_v13, 1 }
 0x1a6   : > { %3673 = vmatmul.mubr.msk.bf16.gmra.mxu1 %vm2348_vm3, %v3007_v35  ;;  %v3227_v1 = vrot.slane %v3176_v19, 1  ;;  %v3288_v42 = vunpack.c.l.bf16 %v3285_v58 }
 0x1a7   : > { %v3233_v4 = vsel %vm3205_vm7, %v3231_v6, %v3232_v56 }
 0x1a8   : > { %v3228_v22 = vsel %vm3205_vm7, %v3226_v16, %v3227_v1 }
 0x22e   : > { %v3662_v7 = vpop.f32.mrf.mxu1 }
 0x22f   : > { %v3087_v0 = vadd.f32 %v3662_v7, %v4578_v14  ;;  %v3177_v7 = vunpack.c.l.bf16 %v3541_v49 }
 0x230   : > { %v3078_v9 = vpop.f32.mrf.mxu1 }
 0x231   : > { %v3257_v30 = vadd.f32 %v3213_v18, %v3087_v0  ;;  %v3079_v8 = vadd.f32 %v4578_v14, %v3078_v9  ;;  %v3234_v0 = vrot.slane %v3180_v59, 1 }
 0x232   : > { %v3663_v43 = vpop.f32.mrf.mxu1 }
 0x233   : > { %3271 = vst.msk [vmem:[%s3909_s3 + $0x10] sm:$0xff] %vm1499_vm2, %v3257_v30  ;;  %v3255_v40 = vadd.f32 %v3208_v12, %v3079_v8  ;;  %v3090_v48 = vadd.f32 %v3663_v43, %v4578_v14  ;;  %v3229_v30 = vrot.slane %v3177_v7, 1 }
 0x234   : > { %v3081_v27 = vpop.f32.mrf.mxu1 }
 0x235   : > { %3269 = vst.msk [vmem:[%s3909_s3] sm:$0xff] %vm1499_vm2, %v3255_v40  ;;  %v3258_v23 = vadd.f32 %v3215_v34, %v3090_v48  ;;  %v3082_v55 = vadd.f32 %v4578_v14, %v3081_v27  ;;  %v3577_v34 = vld [vmem:[%s3939_s28] sm:$0xff]   ;;  %v3235_v48 = vsel %vm3205_vm7, %v3232_v56, %v3234_v0 }
 0x236   : > { %v3578_v26 = vunpack.c.l.bf16 %v3577_v34  ;;  %v3579_v63 = vunpack.c.h.bf16 %v3577_v34 }
 0x237   : > { %3272 = vst.msk [vmem:[%s3909_s3 + $0x18] sm:$0xff] %vm1499_vm2, %v3258_v23  ;;  %v3256_v54 = vadd.f32 %v3210_v41, %v3082_v55  ;;  %v3545_v23 = vld [vmem:[%s3903_s16 + $0x54] sm:$0xff]  }
 0x238   : > { %v3181_v11 = vunpack.c.l.bf16 %v3545_v23  ;;  %v3182_v3 = vunpack.c.h.bf16 %v3545_v23  ;;  %v3292_v53 = vrot.slane %v3578_v26, 1  ;;  %v3293_v62 = vrot.slane %v3579_v63, 1 }
 0x239   : > { %3270 = vst.msk [vmem:[%s3909_s3 + $0x8] sm:$0xff] %vm1499_vm2, %v3256_v54  ;;  %v3230_v54 = vsel %vm3205_vm7, %v3227_v1, %v3229_v30 }
 0x23a   : > { %v3236_v51 = vrot.slane %v3181_v11, 1  ;;  %v3237_v28 = vrot.slane %v3182_v3, 1  ;;  %v3294_v2 = vsel %vm3205_vm7, %v3292_v53, %v3293_v62 }
 0x23c   : > { %v3238_v29 = vsel %vm3205_vm7, %v3236_v51, %v3237_v28 }
 0x243   : > { %v3666_v31 = vpop.f32.mrf.mxu1 }
 0x244   : > { %v3103_v38 = vadd.f32 %v3666_v31, %v4578_v14  ;;  %v3183_v31 = vunpack.c.l.bf16 %v3547_v45 }
 0x245   : > { %v3094_v52 = vpop.f32.mrf.mxu1 }
 0x246   : > { %v3261_v61 = vadd.f32 %v3223_v46, %v3103_v38  ;;  %v3095_v60 = vadd.f32 %v4578_v14, %v3094_v52  ;;  %v3295_v38 = vrot.slane %v3288_v42, 1 }
 0x247   : > { %v3667_v50 = vpop.f32.mrf.mxu1 }
 0x248   : > { %3275 = vst.msk [vmem:[%s3909_s3 + $0x30] sm:$0xff] %vm1499_vm2, %v3261_v61  ;;  %v3259_v24 = vadd.f32 %v3218_v17, %v3095_v60  ;;  %v3106_v5 = vadd.f32 %v3667_v50, %v4578_v14  ;;  %v3239_v61 = vrot.slane %v3183_v31, 1 }
 0x249   : > { %v3097_v57 = vpop.f32.mrf.mxu1 }
 0x24a   : > { %3273 = vst.msk [vmem:[%s3909_s3 + $0x20] sm:$0xff] %vm1499_vm2, %v3259_v24  ;;  %v3262_v37 = vadd.f32 %v3225_v32, %v3106_v5  ;;  %v3098_v35 = vadd.f32 %v4578_v14, %v3097_v57  ;;  %v3296_v24 = vsel %vm3205_vm7, %v3293_v62, %v3295_v38 }
 0x24c   : > { %3276 = vst.msk [vmem:[%s3909_s3 + $0x38] sm:$0xff] %vm1499_vm2, %v3262_v37  ;;  %v3260_v25 = vadd.f32 %v3220_v39, %v3098_v35  ;;  %v3240_v37 = vsel %vm3205_vm7, %v3237_v28, %v3239_v61 }
 0x24e   : > { %3274 = vst.msk [vmem:[%s3909_s3 + $0x28] sm:$0xff] %vm1499_vm2, %v3260_v25 }
 0x258   : > { %v3670_v18 = vpop.f32.mrf.mxu1 }
 0x259   : > { %v3119_v9 = vadd.f32 %v3670_v18, %v4578_v14 }
 0x25a   : > { %v3110_v12 = vpop.f32.mrf.mxu1 }
 0x25b   : > { %v3265_v8 = vadd.f32 %v3233_v4, %v3119_v9  ;;  %v3111_v43 = vadd.f32 %v4578_v14, %v3110_v12 }
 0x25c   : > { %v3671_v40 = vpop.f32.mrf.mxu1 }
 0x25d   : > { %3279 = vst.msk [vmem:[%s3909_s3 + $0x50] sm:$0xff] %vm1499_vm2, %v3265_v8  ;;  %v3263_v27 = vadd.f32 %v3228_v22, %v3111_v43  ;;  %v3122_v41 = vadd.f32 %v3671_v40, %v4578_v14 }
 0x25e   : > { %v3113_v55 = vpop.f32.mrf.mxu1 }
 0x25f   : > { %3277 = vst.msk [vmem:[%s3909_s3 + $0x40] sm:$0xff] %vm1499_vm2, %v3263_v27  ;;  %v3266_v21 = vadd.f32 %v3235_v48, %v3122_v41  ;;  %v3114_v47 = vadd.f32 %v4578_v14, %v3113_v55 }
 0x261   : > { %3280 = vst.msk [vmem:[%s3909_s3 + $0x58] sm:$0xff] %vm1499_vm2, %v3266_v21  ;;  %v3264_v36 = vadd.f32 %v3230_v54, %v3114_v47 }
 0x263   : > { %3278 = vst.msk [vmem:[%s3909_s3 + $0x48] sm:$0xff] %vm1499_vm2, %v3264_v36 }
 0x266   : > { %v3674_v46 = vpop.f32.mrf.mxu1 }
 0x267   : > { %v3135_v52 = vadd.f32 %v3674_v46, %v4578_v14 }
 0x268   : > { %v3126_v17 = vpop.f32.mrf.mxu1 }
 0x269   : > { %v3299_v60 = vadd.f32 %v3294_v2, %v3135_v52  ;;  %v3127_v50 = vadd.f32 %v4578_v14, %v3126_v17 }
 0x26a   : > { %v3675_v32 = vpop.f32.mrf.mxu1 }
 0x26b   : > { %3548 = vst.msk [vmem:[%s3909_s3 + $0x70] sm:$0xff] %vm1499_vm2, %v3299_v60  ;;  %v3267_v5 = vadd.f32 %v3238_v29, %v3127_v50  ;;  %v3138_v57 = vadd.f32 %v3675_v32, %v4578_v14 }
 0x26c   : > { %v3129_v39 = vpop.f32.mrf.mxu1 }
 0x26d   : > { %3281 = vst.msk [vmem:[%s3909_s3 + $0x60] sm:$0xff] %vm1499_vm2, %v3267_v5  ;;  %v3300_v35 = vadd.f32 %v3296_v24, %v3138_v57  ;;  %v3130_v25 = vadd.f32 %v4578_v14, %v3129_v39 }
 0x26f   : > { %3549 = vst.msk [vmem:[%s3909_s3 + $0x78] sm:$0xff] %vm1499_vm2, %v3300_v35  ;;  %v3268_v10 = vadd.f32 %v3240_v37, %v3130_v25 }
 0x271   : > { %3282 = vst.msk [vmem:[%s3909_s3 + $0x68] sm:$0xff] %vm1499_vm2, %v3268_v10 }
 0x272 PF: > { %s19_s13 = sadd.s32 1, %s3773_s13   ;;  %s4683_s30 = smov %s3765_s11 }
 0x273   : > { %p16_p12 = scmp.ge.s32.totalorder %s19_s13, 6   ;;  %s4684_s10 = smov %s3769_s12 }
 0x274   : > { %s4685_s11 = smov %s4688_s14  ;;  %s4686_s12 = smov %s4692_s15 }
 0x275   :  { %18 = sbr.rel (!%p16_p12) target bundleno = 3 (0x3), region = 104 }

</bundles_post_ra>
